<compile_context>
chip_gen: v7x
topology: tpu7x:2x2x1
jax: 0.10.0
libtpu: 0.0.40
codegen_flags: <defaults>
</compile_context>

<pallas_src>
import functools

import jax
import jax.numpy as jnp
from jax import lax
from jax.experimental import pallas as pl
from jax.experimental.pallas import tpu as pltpu


# --------------------------- fused autoencoder kernel ---------------------------

def _fused_autoencoder_kernel(x_ref, ewih_ref, ewhh_ref, eb_ref,
                              dwih_ref, dwhh_ref, db_ref,
                              out_ref, *, T, B, E, Hd, E_pad):
    """Fused encoder-LSTM -> repeat -> decoder-LSTM forward.

    x_ref   : (T*B, F)        time-major, flattened (row = t*B + b) input
    ewih_ref: (F, 4E)         encoder input->gates weight (pre-transposed, [i,f,o,g] columns)
    ewhh_ref: (E, 4E)         encoder hidden->gates weight (pre-transposed, [i,f,o,g] columns)
    eb_ref  : (1, 4E)         encoder combined bias (b_ih + b_hh, [i,f,o,g])
    dwih_ref: (E, 4Hd)        decoder input->gates weight
    dwhh_ref: (Hd, 4Hd)       decoder hidden->gates weight
    db_ref  : (1, 4Hd)        decoder combined bias
    out_ref : (B, E_pad+T*Hd) lane-dense packed output:
                              [:, :E]              = encoder final hidden (embedding)
                              [:, E_pad + t*Hd : ] = decoder hidden at step t
    """

    def lstm_cell(gates, c, H):
        # Gates arrive permuted as [i, f, o, g]: one sigmoid over the contiguous 3H block
        # (i/f/o) and one tanh over g -> 2 EUP launches instead of 4, 2 slices instead of 4.
        sfo = jax.nn.sigmoid(gates[:, :3 * H])
        g = jnp.tanh(gates[:, 3 * H:])
        i = sfo[:, 0 * H:1 * H]
        f = sfo[:, 1 * H:2 * H]
        o = sfo[:, 2 * H:3 * H]
        c_new = f * c + i * g
        h_new = o * jnp.tanh(c_new)
        return h_new, c_new

    # ------------------ Encoder: LSTM(F -> E); only final h is consumed -----------------
    # Hoisted input projection: one (T*B, F) x (F, 4E) MXU matmul + one bias broadcast.
    xg = jnp.dot(x_ref[...], ewih_ref[...],
                 preferred_element_type=jnp.float32) + eb_ref[...]        # (T*B, 4E)
    ewhh = ewhh_ref[...]                                                  # hoisted weight load

    h = jnp.zeros((B, E), jnp.float32)
    c = jnp.zeros((B, E), jnp.float32)
    for t in range(T):                                                    # fully unrolled
        gates = xg[t * B:(t + 1) * B, :] + jnp.dot(
            h, ewhh, preferred_element_type=jnp.float32)                  # (B, 4E)
        h, c = lstm_cell(gates, c, E)

    # Embedding padded to a 128-lane multiple so the final store is unmasked (lane-dense).
    if E_pad > E:
        enc_out = jnp.concatenate(
            [h, jnp.zeros((B, E_pad - E), jnp.float32)], axis=-1)         # (B, E_pad)
    else:
        enc_out = h

    # ------------- Decoder: input = encoded repeated T times; LSTM(E -> Hd) -------------
    # The repeated input means its projection is identical every step: compute it once.
    xg_d = jnp.dot(h, dwih_ref[...],
                   preferred_element_type=jnp.float32) + db_ref[...]      # (B, 4Hd)
    dwhh = dwhh_ref[...]

    hd = jnp.zeros((B, Hd), jnp.float32)
    cd = jnp.zeros((B, Hd), jnp.float32)

    # Scaling guard: if Hd is a multiple of 128, per-step stores are already unmasked and
    # keep vreg pressure flat; otherwise a single end-of-loop lane-dense concat store wins.
    per_step_store = (Hd % 128 == 0)
    if per_step_store:
        out_ref[:, 0:E_pad] = enc_out

    outs = []
    for t in range(T):                                                    # fully unrolled
        gates = xg_d + jnp.dot(hd, dwhh, preferred_element_type=jnp.float32)
        hd, cd = lstm_cell(gates, cd, Hd)
        if per_step_store:
            out_ref[:, E_pad + t * Hd:E_pad + (t + 1) * Hd] = hd
        else:
            outs.append(hd)

    if not per_step_store:
        # ONE unmasked, lane-dense store of embedding + whole decoded sequence.
        out_ref[...] = jnp.concatenate([enc_out] + outs, axis=-1)


# ------------------------ one-time host-side parameter prep ------------------------

def prepare_params(params):
    """One-time prep (call once at init): transpose weights, combine biases, cast to f32,
    and permute gate columns [i,f,g,o] -> [i,f,o,g] so the kernel needs one sigmoid + one
    tanh per step. Nothing here runs in the per-call hot path."""

    def prep(w_ih, w_hh, b_ih, b_hh):
        H = w_hh.shape[1]
        perm = jnp.concatenate([jnp.arange(0, 2 * H),      # i, f
                                jnp.arange(3 * H, 4 * H),   # o
                                jnp.arange(2 * H, 3 * H)])  # g
        w_ih_t = jnp.transpose(w_ih).astype(jnp.float32)[:, perm]     # (in, 4H)
        w_hh_t = jnp.transpose(w_hh).astype(jnp.float32)[:, perm]     # (H, 4H)
        b = (b_ih + b_hh).astype(jnp.float32)[perm].reshape(1, 4 * H)
        return w_ih_t, w_hh_t, b

    e_wih, e_whh, e_b = prep(params["enc_w_ih"], params["enc_w_hh"],
                             params["enc_b_ih"], params["enc_b_hh"])
    d_wih, d_whh, d_b = prep(params["dec_w_ih"], params["dec_w_hh"],
                             params["dec_b_ih"], params["dec_b_hh"])
    return dict(e_wih=e_wih, e_whh=e_whh, e_b=e_b,
                d_wih=d_wih, d_whh=d_whh, d_b=d_b)


# ------------------------- RecurrentAutoencoder forward ------------------------

def recurrent_autoencoder_forward(x, prepped):
    """x: (B, seq_len, n_features) -> (encoded (B, E), decoded (B, seq_len, n_features))."""
    B, T, F = x.shape
    E = prepped["e_whh"].shape[0]
    Hd = prepped["d_whh"].shape[0]
    E_pad = -(-E // 128) * 128                 # lane-dense slot for the embedding
    out_w = E_pad + T * Hd

    # Only remaining per-call prep: time-major flatten so the kernel can do one big
    # input-projection matmul.
    x_flat = jnp.transpose(x, (1, 0, 2)).astype(jnp.float32).reshape(T * B, F)

    kernel = functools.partial(_fused_autoencoder_kernel,
                               T=T, B=B, E=E, Hd=Hd, E_pad=E_pad)

    # Right-sized scoped-VMEM budget: inputs + output + major intermediates, 2x headroom,
    # 4 MiB floor (instead of a blanket 32 MiB that starves neighboring fusions on v7x).
    n_elems = (T * B * F                                  # x_flat
               + F * 4 * E + E * 4 * E + 4 * E            # encoder params
               + E * 4 * Hd + Hd * 4 * Hd + 4 * Hd        # decoder params
               + B * out_w                                # output
               + T * B * 4 * E + B * 4 * Hd               # hoisted gate projections
               + B * out_w)                               # concat staging
    vmem_limit = int(max(4 << 20, 2 * 4 * n_elems))

    cost = pl.CostEstimate(
        flops=(2 * T * B * F * 4 * E            # encoder input projection
               + T * 2 * B * E * 4 * E          # encoder recurrence
               + 2 * B * E * 4 * Hd             # decoder input projection (once)
               + T * 2 * B * Hd * 4 * Hd),      # decoder recurrence
        transcendentals=T * B * 5 * (E + Hd),
        bytes_accessed=4 * n_elems,
    )

    vmem = pl.BlockSpec(memory_space=pltpu.MemorySpace.VMEM)
    out = pl.pallas_call(
        kernel,
        out_shape=jax.ShapeDtypeStruct((B, out_w), jnp.float32),
        in_specs=[vmem] * 7,
        out_specs=vmem,
        compiler_params=pltpu.CompilerParams(vmem_limit_bytes=vmem_limit),
        cost_estimate=cost,
    )(x_flat, prepped["e_wih"], prepped["e_whh"], prepped["e_b"],
      prepped["d_wih"], prepped["d_whh"], prepped["d_b"])

    encoded = out[:, :E]
    decoded = out[:, E_pad:E_pad + T * Hd].reshape(B, T, Hd)
    return encoded, decoded


# ------------------------------ pure-JAX reference -----------------------------

def _lstm_ref(x, w_ih, w_hh, b_ih, b_hh):
    B, T, F = x.shape
    H = w_hh.shape[1]

    def step(carry, xt):
        h, c = carry
        gates = xt @ w_ih.T + h @ w_hh.T + b_ih + b_hh
        i = jax.nn.sigmoid(gates[:, 0 * H:1 * H])
        f = jax.nn.sigmoid(gates[:, 1 * H:2 * H])
        g = jnp.tanh(gates[:, 2 * H:3 * H])
        o = jax.nn.sigmoid(gates[:, 3 * H:4 * H])
        c = f * c + i * g
        h = o * jnp.tanh(c)
        return (h, c), h

    init = (jnp.zeros((B, H), jnp.float32), jnp.zeros((B, H), jnp.float32))
    (h, _), ys = lax.scan(step, init, jnp.transpose(x, (1, 0, 2)))
    return h, jnp.transpose(ys, (1, 0, 2))


def _ref_forward(x, params):
    enc_hN, _ = _lstm_ref(x, params["enc_w_ih"], params["enc_w_hh"],
                          params["enc_b_ih"], params["enc_b_hh"])
    B, E = enc_hN.shape
    T = x.shape[1]
    dec_in = jnp.broadcast_to(enc_hN[:, None, :], (B, T, E))
    _, decoded = _lstm_ref(dec_in, params["dec_w_ih"], params["dec_w_hh"],
                           params["dec_b_ih"], params["dec_b_hh"])
    return enc_hN, decoded


# ----------------------------------- main --------------------------------------

def _init_lstm_params(key, input_size, hidden_size):
    """Deterministic init matching PyTorch LSTM param shapes: U(-1/sqrt(H), 1/sqrt(H))."""
    k = 1.0 / jnp.sqrt(jnp.float32(hidden_size))
    k1, k2, k3, k4 = jax.random.split(key, 4)
    w_ih = jax.random.uniform(k1, (4 * hidden_size, input_size), jnp.float32, -k, k)
    w_hh = jax.random.uniform(k2, (4 * hidden_size, hidden_size), jnp.float32, -k, k)
    b_ih = jax.random.uniform(k3, (4 * hidden_size,), jnp.float32, -k, k)
    b_hh = jax.random.uniform(k4, (4 * hidden_size,), jnp.float32, -k, k)
    return w_ih, w_hh, b_ih, b_hh


if __name__ == "__main__":
    # Small shapes consistent with RecurrentAutoencoder(seq_len, n_features, embedding_dim).
    batch, seq_len, n_features, embedding_dim = 2, 8, 16, 32

    key = jax.random.PRNGKey(0)
    kx, kenc, kdec = jax.random.split(key, 3)

    x = jax.random.normal(kx, (batch, seq_len, n_features), jnp.float32)

    enc_w_ih, enc_w_hh, enc_b_ih, enc_b_hh = _init_lstm_params(kenc, n_features, embedding_dim)
    dec_w_ih, dec_w_hh, dec_b_ih, dec_b_hh = _init_lstm_params(kdec, embedding_dim, n_features)
    params = dict(
        enc_w_ih=enc_w_ih, enc_w_hh=enc_w_hh, enc_b_ih=enc_b_ih, enc_b_hh=enc_b_hh,
        dec_w_ih=dec_w_ih, dec_w_hh=dec_w_hh, dec_b_ih=dec_b_ih, dec_b_hh=dec_b_hh,
    )

    # One-time parameter prep (hoisted out of the per-call hot path).
    prepped = prepare_params(params)
    jax.block_until_ready(prepped)

    fwd = jax.jit(recurrent_autoencoder_forward)
    encoded, decoded = fwd(x, prepped)
    jax.block_until_ready((encoded, decoded))

    assert encoded.shape == (batch, embedding_dim), encoded.shape
    assert decoded.shape == (batch, seq_len, n_features), decoded.shape

    # Correctness check against a pure-JAX LSTM reference (original [i,f,g,o] params).
    ref_enc, ref_dec = _ref_forward(x, params)
    assert jnp.allclose(encoded, ref_enc, atol=2e-3, rtol=2e-3)
    assert jnp.allclose(decoded, ref_dec, atol=2e-3, rtol=2e-3)

    print("KERNEL_OK")
</pallas_src>

<mosaic_0001>
module attributes {stable_mosaic.version = 11 : i64} {
  func.func @_fused_autoencoder_kernel(%arg0: memref<16x16xf32, #tpu.memory_space<vmem>>, %arg1: memref<16x128xf32, #tpu.memory_space<vmem>>, %arg2: memref<32x128xf32, #tpu.memory_space<vmem>>, %arg3: memref<1x128xf32, #tpu.memory_space<vmem>>, %arg4: memref<32x64xf32, #tpu.memory_space<vmem>>, %arg5: memref<16x64xf32, #tpu.memory_space<vmem>>, %arg6: memref<1x64xf32, #tpu.memory_space<vmem>>, %arg7: memref<2x256xf32, #tpu.memory_space<vmem>>) attributes {dimension_semantics = [], scalar_prefetch = 0 : i64, scratch_operands = 0 : i64, tpu.core_type = #tpu.core_type<tc>} {
    %c0 = arith.constant 0 : index
    %c0_0 = arith.constant 0 : index
    %0 = vector.load %arg0[%c0, %c0_0] : memref<16x16xf32, #tpu.memory_space<vmem>>, vector<16x16xf32>
    %c0_1 = arith.constant 0 : index
    %c0_2 = arith.constant 0 : index
    %1 = vector.load %arg1[%c0_1, %c0_2] : memref<16x128xf32, #tpu.memory_space<vmem>>, vector<16x128xf32>
    %cst = arith.constant dense<0.000000e+00> : vector<16x128xf32>
    %2 = tpu.matmul %0, %1, %cst {dimension_numbers = #tpu.dot_dimension_numbers<[1], [0], [0], [1], [0, 0, 1, 1], [], []>} : vector<16x16xf32>, vector<16x128xf32>, vector<16x128xf32> -> vector<16x128xf32>
    %c0_3 = arith.constant 0 : index
    %c0_4 = arith.constant 0 : index
    %3 = vector.load %arg3[%c0_3, %c0_4] : memref<1x128xf32, #tpu.memory_space<vmem>>, vector<1x128xf32>
    %4 = vector.broadcast %3 : vector<1x128xf32> to vector<16x128xf32>
    %5 = arith.addf %2, %4 : vector<16x128xf32>
    %c0_5 = arith.constant 0 : index
    %c0_6 = arith.constant 0 : index
    %6 = vector.load %arg2[%c0_5, %c0_6] : memref<32x128xf32, #tpu.memory_space<vmem>>, vector<32x128xf32>
    %cst_7 = arith.constant 0.000000e+00 : f32
    %7 = vector.broadcast %cst_7 : f32 to vector<2x32xf32>
    %cst_8 = arith.constant 0.000000e+00 : f32
    %8 = vector.broadcast %cst_8 : f32 to vector<2x32xf32>
    %9 = vector.extract_strided_slice %5 {offsets = [0, 0], sizes = [2, 128], strides = [1, 1]} : vector<16x128xf32> to vector<2x128xf32>
    %cst_9 = arith.constant dense<0.000000e+00> : vector<2x128xf32>
    %10 = tpu.matmul %7, %6, %cst_9 {dimension_numbers = #tpu.dot_dimension_numbers<[1], [0], [0], [1], [0, 0, 1, 1], [], []>} : vector<2x32xf32>, vector<32x128xf32>, vector<2x128xf32> -> vector<2x128xf32>
    %11 = arith.addf %9, %10 : vector<2x128xf32>
    %12 = vector.extract_strided_slice %11 {offsets = [0, 0], sizes = [2, 96], strides = [1, 1]} : vector<2x128xf32> to vector<2x96xf32>
    %13 = arith.negf %12 : vector<2x96xf32>
    %14 = math.exp %13 : vector<2x96xf32>
    %cst_10 = arith.constant 1.000000e+00 : f32
    %15 = vector.broadcast %cst_10 : f32 to vector<2x96xf32>
    %16 = arith.addf %15, %14 : vector<2x96xf32>
    %17 = arith.divf %15, %16 : vector<2x96xf32>
    %18 = vector.extract_strided_slice %11 {offsets = [0, 96], sizes = [2, 32], strides = [1, 1]} : vector<2x128xf32> to vector<2x32xf32>
    %19 = math.tanh %18 : vector<2x32xf32>
    %20 = vector.extract_strided_slice %17 {offsets = [0, 0], sizes = [2, 32], strides = [1, 1]} : vector<2x96xf32> to vector<2x32xf32>
    %21 = vector.extract_strided_slice %17 {offsets = [0, 32], sizes = [2, 32], strides = [1, 1]} : vector<2x96xf32> to vector<2x32xf32>
    %22 = vector.extract_strided_slice %17 {offsets = [0, 64], sizes = [2, 32], strides = [1, 1]} : vector<2x96xf32> to vector<2x32xf32>
    %23 = arith.mulf %21, %8 : vector<2x32xf32>
    %24 = arith.mulf %20, %19 : vector<2x32xf32>
    %25 = arith.addf %23, %24 : vector<2x32xf32>
    %26 = math.tanh %25 : vector<2x32xf32>
    %27 = arith.mulf %22, %26 : vector<2x32xf32>
    %28 = vector.extract_strided_slice %5 {offsets = [2, 0], sizes = [2, 128], strides = [1, 1]} : vector<16x128xf32> to vector<2x128xf32>
    %cst_11 = arith.constant dense<0.000000e+00> : vector<2x128xf32>
    %29 = tpu.matmul %27, %6, %cst_11 {dimension_numbers = #tpu.dot_dimension_numbers<[1], [0], [0], [1], [0, 0, 1, 1], [], []>} : vector<2x32xf32>, vector<32x128xf32>, vector<2x128xf32> -> vector<2x128xf32>
    %30 = arith.addf %28, %29 : vector<2x128xf32>
    %31 = vector.extract_strided_slice %30 {offsets = [0, 0], sizes = [2, 96], strides = [1, 1]} : vector<2x128xf32> to vector<2x96xf32>
    %32 = arith.negf %31 : vector<2x96xf32>
    %33 = math.exp %32 : vector<2x96xf32>
    %cst_12 = arith.constant 1.000000e+00 : f32
    %34 = vector.broadcast %cst_12 : f32 to vector<2x96xf32>
    %35 = arith.addf %34, %33 : vector<2x96xf32>
    %36 = arith.divf %34, %35 : vector<2x96xf32>
    %37 = vector.extract_strided_slice %30 {offsets = [0, 96], sizes = [2, 32], strides = [1, 1]} : vector<2x128xf32> to vector<2x32xf32>
    %38 = math.tanh %37 : vector<2x32xf32>
    %39 = vector.extract_strided_slice %36 {offsets = [0, 0], sizes = [2, 32], strides = [1, 1]} : vector<2x96xf32> to vector<2x32xf32>
    %40 = vector.extract_strided_slice %36 {offsets = [0, 32], sizes = [2, 32], strides = [1, 1]} : vector<2x96xf32> to vector<2x32xf32>
    %41 = vector.extract_strided_slice %36 {offsets = [0, 64], sizes = [2, 32], strides = [1, 1]} : vector<2x96xf32> to vector<2x32xf32>
    %42 = arith.mulf %40, %25 : vector<2x32xf32>
    %43 = arith.mulf %39, %38 : vector<2x32xf32>
    %44 = arith.addf %42, %43 : vector<2x32xf32>
    %45 = math.tanh %44 : vector<2x32xf32>
    %46 = arith.mulf %41, %45 : vector<2x32xf32>
    %47 = vector.extract_strided_slice %5 {offsets = [4, 0], sizes = [2, 128], strides = [1, 1]} : vector<16x128xf32> to vector<2x128xf32>
    %cst_13 = arith.constant dense<0.000000e+00> : vector<2x128xf32>
    %48 = tpu.matmul %46, %6, %cst_13 {dimension_numbers = #tpu.dot_dimension_numbers<[1], [0], [0], [1], [0, 0, 1, 1], [], []>} : vector<2x32xf32>, vector<32x128xf32>, vector<2x128xf32> -> vector<2x128xf32>
    %49 = arith.addf %47, %48 : vector<2x128xf32>
    %50 = vector.extract_strided_slice %49 {offsets = [0, 0], sizes = [2, 96], strides = [1, 1]} : vector<2x128xf32> to vector<2x96xf32>
    %51 = arith.negf %50 : vector<2x96xf32>
    %52 = math.exp %51 : vector<2x96xf32>
    %cst_14 = arith.constant 1.000000e+00 : f32
    %53 = vector.broadcast %cst_14 : f32 to vector<2x96xf32>
    %54 = arith.addf %53, %52 : vector<2x96xf32>
    %55 = arith.divf %53, %54 : vector<2x96xf32>
    %56 = vector.extract_strided_slice %49 {offsets = [0, 96], sizes = [2, 32], strides = [1, 1]} : vector<2x128xf32> to vector<2x32xf32>
    %57 = math.tanh %56 : vector<2x32xf32>
    %58 = vector.extract_strided_slice %55 {offsets = [0, 0], sizes = [2, 32], strides = [1, 1]} : vector<2x96xf32> to vector<2x32xf32>
    %59 = vector.extract_strided_slice %55 {offsets = [0, 32], sizes = [2, 32], strides = [1, 1]} : vector<2x96xf32> to vector<2x32xf32>
    %60 = vector.extract_strided_slice %55 {offsets = [0, 64], sizes = [2, 32], strides = [1, 1]} : vector<2x96xf32> to vector<2x32xf32>
    %61 = arith.mulf %59, %44 : vector<2x32xf32>
    %62 = arith.mulf %58, %57 : vector<2x32xf32>
    %63 = arith.addf %61, %62 : vector<2x32xf32>
    %64 = math.tanh %63 : vector<2x32xf32>
    %65 = arith.mulf %60, %64 : vector<2x32xf32>
    %66 = vector.extract_strided_slice %5 {offsets = [6, 0], sizes = [2, 128], strides = [1, 1]} : vector<16x128xf32> to vector<2x128xf32>
    %cst_15 = arith.constant dense<0.000000e+00> : vector<2x128xf32>
    %67 = tpu.matmul %65, %6, %cst_15 {dimension_numbers = #tpu.dot_dimension_numbers<[1], [0], [0], [1], [0, 0, 1, 1], [], []>} : vector<2x32xf32>, vector<32x128xf32>, vector<2x128xf32> -> vector<2x128xf32>
    %68 = arith.addf %66, %67 : vector<2x128xf32>
    %69 = vector.extract_strided_slice %68 {offsets = [0, 0], sizes = [2, 96], strides = [1, 1]} : vector<2x128xf32> to vector<2x96xf32>
    %70 = arith.negf %69 : vector<2x96xf32>
    %71 = math.exp %70 : vector<2x96xf32>
    %cst_16 = arith.constant 1.000000e+00 : f32
    %72 = vector.broadcast %cst_16 : f32 to vector<2x96xf32>
    %73 = arith.addf %72, %71 : vector<2x96xf32>
    %74 = arith.divf %72, %73 : vector<2x96xf32>
    %75 = vector.extract_strided_slice %68 {offsets = [0, 96], sizes = [2, 32], strides = [1, 1]} : vector<2x128xf32> to vector<2x32xf32>
    %76 = math.tanh %75 : vector<2x32xf32>
    %77 = vector.extract_strided_slice %74 {offsets = [0, 0], sizes = [2, 32], strides = [1, 1]} : vector<2x96xf32> to vector<2x32xf32>
    %78 = vector.extract_strided_slice %74 {offsets = [0, 32], sizes = [2, 32], strides = [1, 1]} : vector<2x96xf32> to vector<2x32xf32>
    %79 = vector.extract_strided_slice %74 {offsets = [0, 64], sizes = [2, 32], strides = [1, 1]} : vector<2x96xf32> to vector<2x32xf32>
    %80 = arith.mulf %78, %63 : vector<2x32xf32>
    %81 = arith.mulf %77, %76 : vector<2x32xf32>
    %82 = arith.addf %80, %81 : vector<2x32xf32>
    %83 = math.tanh %82 : vector<2x32xf32>
    %84 = arith.mulf %79, %83 : vector<2x32xf32>
    %85 = vector.extract_strided_slice %5 {offsets = [8, 0], sizes = [2, 128], strides = [1, 1]} : vector<16x128xf32> to vector<2x128xf32>
    %cst_17 = arith.constant dense<0.000000e+00> : vector<2x128xf32>
    %86 = tpu.matmul %84, %6, %cst_17 {dimension_numbers = #tpu.dot_dimension_numbers<[1], [0], [0], [1], [0, 0, 1, 1], [], []>} : vector<2x32xf32>, vector<32x128xf32>, vector<2x128xf32> -> vector<2x128xf32>
    %87 = arith.addf %85, %86 : vector<2x128xf32>
    %88 = vector.extract_strided_slice %87 {offsets = [0, 0], sizes = [2, 96], strides = [1, 1]} : vector<2x128xf32> to vector<2x96xf32>
    %89 = arith.negf %88 : vector<2x96xf32>
    %90 = math.exp %89 : vector<2x96xf32>
    %cst_18 = arith.constant 1.000000e+00 : f32
    %91 = vector.broadcast %cst_18 : f32 to vector<2x96xf32>
    %92 = arith.addf %91, %90 : vector<2x96xf32>
    %93 = arith.divf %91, %92 : vector<2x96xf32>
    %94 = vector.extract_strided_slice %87 {offsets = [0, 96], sizes = [2, 32], strides = [1, 1]} : vector<2x128xf32> to vector<2x32xf32>
    %95 = math.tanh %94 : vector<2x32xf32>
    %96 = vector.extract_strided_slice %93 {offsets = [0, 0], sizes = [2, 32], strides = [1, 1]} : vector<2x96xf32> to vector<2x32xf32>
    %97 = vector.extract_strided_slice %93 {offsets = [0, 32], sizes = [2, 32], strides = [1, 1]} : vector<2x96xf32> to vector<2x32xf32>
    %98 = vector.extract_strided_slice %93 {offsets = [0, 64], sizes = [2, 32], strides = [1, 1]} : vector<2x96xf32> to vector<2x32xf32>
    %99 = arith.mulf %97, %82 : vector<2x32xf32>
    %100 = arith.mulf %96, %95 : vector<2x32xf32>
    %101 = arith.addf %99, %100 : vector<2x32xf32>
    %102 = math.tanh %101 : vector<2x32xf32>
    %103 = arith.mulf %98, %102 : vector<2x32xf32>
    %104 = vector.extract_strided_slice %5 {offsets = [10, 0], sizes = [2, 128], strides = [1, 1]} : vector<16x128xf32> to vector<2x128xf32>
    %cst_19 = arith.constant dense<0.000000e+00> : vector<2x128xf32>
    %105 = tpu.matmul %103, %6, %cst_19 {dimension_numbers = #tpu.dot_dimension_numbers<[1], [0], [0], [1], [0, 0, 1, 1], [], []>} : vector<2x32xf32>, vector<32x128xf32>, vector<2x128xf32> -> vector<2x128xf32>
    %106 = arith.addf %104, %105 : vector<2x128xf32>
    %107 = vector.extract_strided_slice %106 {offsets = [0, 0], sizes = [2, 96], strides = [1, 1]} : vector<2x128xf32> to vector<2x96xf32>
    %108 = arith.negf %107 : vector<2x96xf32>
    %109 = math.exp %108 : vector<2x96xf32>
    %cst_20 = arith.constant 1.000000e+00 : f32
    %110 = vector.broadcast %cst_20 : f32 to vector<2x96xf32>
    %111 = arith.addf %110, %109 : vector<2x96xf32>
    %112 = arith.divf %110, %111 : vector<2x96xf32>
    %113 = vector.extract_strided_slice %106 {offsets = [0, 96], sizes = [2, 32], strides = [1, 1]} : vector<2x128xf32> to vector<2x32xf32>
    %114 = math.tanh %113 : vector<2x32xf32>
    %115 = vector.extract_strided_slice %112 {offsets = [0, 0], sizes = [2, 32], strides = [1, 1]} : vector<2x96xf32> to vector<2x32xf32>
    %116 = vector.extract_strided_slice %112 {offsets = [0, 32], sizes = [2, 32], strides = [1, 1]} : vector<2x96xf32> to vector<2x32xf32>
    %117 = vector.extract_strided_slice %112 {offsets = [0, 64], sizes = [2, 32], strides = [1, 1]} : vector<2x96xf32> to vector<2x32xf32>
    %118 = arith.mulf %116, %101 : vector<2x32xf32>
    %119 = arith.mulf %115, %114 : vector<2x32xf32>
    %120 = arith.addf %118, %119 : vector<2x32xf32>
    %121 = math.tanh %120 : vector<2x32xf32>
    %122 = arith.mulf %117, %121 : vector<2x32xf32>
    %123 = vector.extract_strided_slice %5 {offsets = [12, 0], sizes = [2, 128], strides = [1, 1]} : vector<16x128xf32> to vector<2x128xf32>
    %cst_21 = arith.constant dense<0.000000e+00> : vector<2x128xf32>
    %124 = tpu.matmul %122, %6, %cst_21 {dimension_numbers = #tpu.dot_dimension_numbers<[1], [0], [0], [1], [0, 0, 1, 1], [], []>} : vector<2x32xf32>, vector<32x128xf32>, vector<2x128xf32> -> vector<2x128xf32>
    %125 = arith.addf %123, %124 : vector<2x128xf32>
    %126 = vector.extract_strided_slice %125 {offsets = [0, 0], sizes = [2, 96], strides = [1, 1]} : vector<2x128xf32> to vector<2x96xf32>
    %127 = arith.negf %126 : vector<2x96xf32>
    %128 = math.exp %127 : vector<2x96xf32>
    %cst_22 = arith.constant 1.000000e+00 : f32
    %129 = vector.broadcast %cst_22 : f32 to vector<2x96xf32>
    %130 = arith.addf %129, %128 : vector<2x96xf32>
    %131 = arith.divf %129, %130 : vector<2x96xf32>
    %132 = vector.extract_strided_slice %125 {offsets = [0, 96], sizes = [2, 32], strides = [1, 1]} : vector<2x128xf32> to vector<2x32xf32>
    %133 = math.tanh %132 : vector<2x32xf32>
    %134 = vector.extract_strided_slice %131 {offsets = [0, 0], sizes = [2, 32], strides = [1, 1]} : vector<2x96xf32> to vector<2x32xf32>
    %135 = vector.extract_strided_slice %131 {offsets = [0, 32], sizes = [2, 32], strides = [1, 1]} : vector<2x96xf32> to vector<2x32xf32>
    %136 = vector.extract_strided_slice %131 {offsets = [0, 64], sizes = [2, 32], strides = [1, 1]} : vector<2x96xf32> to vector<2x32xf32>
    %137 = arith.mulf %135, %120 : vector<2x32xf32>
    %138 = arith.mulf %134, %133 : vector<2x32xf32>
    %139 = arith.addf %137, %138 : vector<2x32xf32>
    %140 = math.tanh %139 : vector<2x32xf32>
    %141 = arith.mulf %136, %140 : vector<2x32xf32>
    %142 = vector.extract_strided_slice %5 {offsets = [14, 0], sizes = [2, 128], strides = [1, 1]} : vector<16x128xf32> to vector<2x128xf32>
    %cst_23 = arith.constant dense<0.000000e+00> : vector<2x128xf32>
    %143 = tpu.matmul %141, %6, %cst_23 {dimension_numbers = #tpu.dot_dimension_numbers<[1], [0], [0], [1], [0, 0, 1, 1], [], []>} : vector<2x32xf32>, vector<32x128xf32>, vector<2x128xf32> -> vector<2x128xf32>
    %144 = arith.addf %142, %143 : vector<2x128xf32>
    %145 = vector.extract_strided_slice %144 {offsets = [0, 0], sizes = [2, 96], strides = [1, 1]} : vector<2x128xf32> to vector<2x96xf32>
    %146 = arith.negf %145 : vector<2x96xf32>
    %147 = math.exp %146 : vector<2x96xf32>
    %cst_24 = arith.constant 1.000000e+00 : f32
    %148 = vector.broadcast %cst_24 : f32 to vector<2x96xf32>
    %149 = arith.addf %148, %147 : vector<2x96xf32>
    %150 = arith.divf %148, %149 : vector<2x96xf32>
    %151 = vector.extract_strided_slice %144 {offsets = [0, 96], sizes = [2, 32], strides = [1, 1]} : vector<2x128xf32> to vector<2x32xf32>
    %152 = math.tanh %151 : vector<2x32xf32>
    %153 = vector.extract_strided_slice %150 {offsets = [0, 0], sizes = [2, 32], strides = [1, 1]} : vector<2x96xf32> to vector<2x32xf32>
    %154 = vector.extract_strided_slice %150 {offsets = [0, 32], sizes = [2, 32], strides = [1, 1]} : vector<2x96xf32> to vector<2x32xf32>
    %155 = vector.extract_strided_slice %150 {offsets = [0, 64], sizes = [2, 32], strides = [1, 1]} : vector<2x96xf32> to vector<2x32xf32>
    %156 = arith.mulf %154, %139 : vector<2x32xf32>
    %157 = arith.mulf %153, %152 : vector<2x32xf32>
    %158 = arith.addf %156, %157 : vector<2x32xf32>
    %159 = math.tanh %158 : vector<2x32xf32>
    %160 = arith.mulf %155, %159 : vector<2x32xf32>
    %cst_25 = arith.constant 0.000000e+00 : f32
    %161 = vector.broadcast %cst_25 : f32 to vector<2x96xf32>
    %162 = tpu.concatenate %160, %161 in 1 : vector<2x32xf32>, vector<2x96xf32> -> vector<2x128xf32>
    %c0_26 = arith.constant 0 : index
    %c0_27 = arith.constant 0 : index
    %163 = vector.load %arg4[%c0_26, %c0_27] : memref<32x64xf32, #tpu.memory_space<vmem>>, vector<32x64xf32>
    %cst_28 = arith.constant dense<0.000000e+00> : vector<2x64xf32>
    %164 = tpu.matmul %160, %163, %cst_28 {dimension_numbers = #tpu.dot_dimension_numbers<[1], [0], [0], [1], [0, 0, 1, 1], [], []>} : vector<2x32xf32>, vector<32x64xf32>, vector<2x64xf32> -> vector<2x64xf32>
    %c0_29 = arith.constant 0 : index
    %c0_30 = arith.constant 0 : index
    %165 = vector.load %arg6[%c0_29, %c0_30] : memref<1x64xf32, #tpu.memory_space<vmem>>, vector<1x64xf32>
    %166 = vector.broadcast %165 : vector<1x64xf32> to vector<2x64xf32>
    %167 = arith.addf %164, %166 : vector<2x64xf32>
    %c0_31 = arith.constant 0 : index
    %c0_32 = arith.constant 0 : index
    %168 = vector.load %arg5[%c0_31, %c0_32] : memref<16x64xf32, #tpu.memory_space<vmem>>, vector<16x64xf32>
    %cst_33 = arith.constant 0.000000e+00 : f32
    %169 = vector.broadcast %cst_33 : f32 to vector<2x16xf32>
    %cst_34 = arith.constant 0.000000e+00 : f32
    %170 = vector.broadcast %cst_34 : f32 to vector<2x16xf32>
    %cst_35 = arith.constant dense<0.000000e+00> : vector<2x64xf32>
    %171 = tpu.matmul %169, %168, %cst_35 {dimension_numbers = #tpu.dot_dimension_numbers<[1], [0], [0], [1], [0, 0, 1, 1], [], []>} : vector<2x16xf32>, vector<16x64xf32>, vector<2x64xf32> -> vector<2x64xf32>
    %172 = arith.addf %167, %171 : vector<2x64xf32>
    %173 = vector.extract_strided_slice %172 {offsets = [0, 0], sizes = [2, 48], strides = [1, 1]} : vector<2x64xf32> to vector<2x48xf32>
    %174 = arith.negf %173 : vector<2x48xf32>
    %175 = math.exp %174 : vector<2x48xf32>
    %cst_36 = arith.constant 1.000000e+00 : f32
    %176 = vector.broadcast %cst_36 : f32 to vector<2x48xf32>
    %177 = arith.addf %176, %175 : vector<2x48xf32>
    %178 = arith.divf %176, %177 : vector<2x48xf32>
    %179 = vector.extract_strided_slice %172 {offsets = [0, 48], sizes = [2, 16], strides = [1, 1]} : vector<2x64xf32> to vector<2x16xf32>
    %180 = math.tanh %179 : vector<2x16xf32>
    %181 = vector.extract_strided_slice %178 {offsets = [0, 0], sizes = [2, 16], strides = [1, 1]} : vector<2x48xf32> to vector<2x16xf32>
    %182 = vector.extract_strided_slice %178 {offsets = [0, 16], sizes = [2, 16], strides = [1, 1]} : vector<2x48xf32> to vector<2x16xf32>
    %183 = vector.extract_strided_slice %178 {offsets = [0, 32], sizes = [2, 16], strides = [1, 1]} : vector<2x48xf32> to vector<2x16xf32>
    %184 = arith.mulf %182, %170 : vector<2x16xf32>
    %185 = arith.mulf %181, %180 : vector<2x16xf32>
    %186 = arith.addf %184, %185 : vector<2x16xf32>
    %187 = math.tanh %186 : vector<2x16xf32>
    %188 = arith.mulf %183, %187 : vector<2x16xf32>
    %cst_37 = arith.constant dense<0.000000e+00> : vector<2x64xf32>
    %189 = tpu.matmul %188, %168, %cst_37 {dimension_numbers = #tpu.dot_dimension_numbers<[1], [0], [0], [1], [0, 0, 1, 1], [], []>} : vector<2x16xf32>, vector<16x64xf32>, vector<2x64xf32> -> vector<2x64xf32>
    %190 = arith.addf %167, %189 : vector<2x64xf32>
    %191 = vector.extract_strided_slice %190 {offsets = [0, 0], sizes = [2, 48], strides = [1, 1]} : vector<2x64xf32> to vector<2x48xf32>
    %192 = arith.negf %191 : vector<2x48xf32>
    %193 = math.exp %192 : vector<2x48xf32>
    %cst_38 = arith.constant 1.000000e+00 : f32
    %194 = vector.broadcast %cst_38 : f32 to vector<2x48xf32>
    %195 = arith.addf %194, %193 : vector<2x48xf32>
    %196 = arith.divf %194, %195 : vector<2x48xf32>
    %197 = vector.extract_strided_slice %190 {offsets = [0, 48], sizes = [2, 16], strides = [1, 1]} : vector<2x64xf32> to vector<2x16xf32>
    %198 = math.tanh %197 : vector<2x16xf32>
    %199 = vector.extract_strided_slice %196 {offsets = [0, 0], sizes = [2, 16], strides = [1, 1]} : vector<2x48xf32> to vector<2x16xf32>
    %200 = vector.extract_strided_slice %196 {offsets = [0, 16], sizes = [2, 16], strides = [1, 1]} : vector<2x48xf32> to vector<2x16xf32>
    %201 = vector.extract_strided_slice %196 {offsets = [0, 32], sizes = [2, 16], strides = [1, 1]} : vector<2x48xf32> to vector<2x16xf32>
    %202 = arith.mulf %200, %186 : vector<2x16xf32>
    %203 = arith.mulf %199, %198 : vector<2x16xf32>
    %204 = arith.addf %202, %203 : vector<2x16xf32>
    %205 = math.tanh %204 : vector<2x16xf32>
    %206 = arith.mulf %201, %205 : vector<2x16xf32>
    %cst_39 = arith.constant dense<0.000000e+00> : vector<2x64xf32>
    %207 = tpu.matmul %206, %168, %cst_39 {dimension_numbers = #tpu.dot_dimension_numbers<[1], [0], [0], [1], [0, 0, 1, 1], [], []>} : vector<2x16xf32>, vector<16x64xf32>, vector<2x64xf32> -> vector<2x64xf32>
    %208 = arith.addf %167, %207 : vector<2x64xf32>
    %209 = vector.extract_strided_slice %208 {offsets = [0, 0], sizes = [2, 48], strides = [1, 1]} : vector<2x64xf32> to vector<2x48xf32>
    %210 = arith.negf %209 : vector<2x48xf32>
    %211 = math.exp %210 : vector<2x48xf32>
    %cst_40 = arith.constant 1.000000e+00 : f32
    %212 = vector.broadcast %cst_40 : f32 to vector<2x48xf32>
    %213 = arith.addf %212, %211 : vector<2x48xf32>
    %214 = arith.divf %212, %213 : vector<2x48xf32>
    %215 = vector.extract_strided_slice %208 {offsets = [0, 48], sizes = [2, 16], strides = [1, 1]} : vector<2x64xf32> to vector<2x16xf32>
    %216 = math.tanh %215 : vector<2x16xf32>
    %217 = vector.extract_strided_slice %214 {offsets = [0, 0], sizes = [2, 16], strides = [1, 1]} : vector<2x48xf32> to vector<2x16xf32>
    %218 = vector.extract_strided_slice %214 {offsets = [0, 16], sizes = [2, 16], strides = [1, 1]} : vector<2x48xf32> to vector<2x16xf32>
    %219 = vector.extract_strided_slice %214 {offsets = [0, 32], sizes = [2, 16], strides = [1, 1]} : vector<2x48xf32> to vector<2x16xf32>
    %220 = arith.mulf %218, %204 : vector<2x16xf32>
    %221 = arith.mulf %217, %216 : vector<2x16xf32>
    %222 = arith.addf %220, %221 : vector<2x16xf32>
    %223 = math.tanh %222 : vector<2x16xf32>
    %224 = arith.mulf %219, %223 : vector<2x16xf32>
    %cst_41 = arith.constant dense<0.000000e+00> : vector<2x64xf32>
    %225 = tpu.matmul %224, %168, %cst_41 {dimension_numbers = #tpu.dot_dimension_numbers<[1], [0], [0], [1], [0, 0, 1, 1], [], []>} : vector<2x16xf32>, vector<16x64xf32>, vector<2x64xf32> -> vector<2x64xf32>
    %226 = arith.addf %167, %225 : vector<2x64xf32>
    %227 = vector.extract_strided_slice %226 {offsets = [0, 0], sizes = [2, 48], strides = [1, 1]} : vector<2x64xf32> to vector<2x48xf32>
    %228 = arith.negf %227 : vector<2x48xf32>
    %229 = math.exp %228 : vector<2x48xf32>
    %cst_42 = arith.constant 1.000000e+00 : f32
    %230 = vector.broadcast %cst_42 : f32 to vector<2x48xf32>
    %231 = arith.addf %230, %229 : vector<2x48xf32>
    %232 = arith.divf %230, %231 : vector<2x48xf32>
    %233 = vector.extract_strided_slice %226 {offsets = [0, 48], sizes = [2, 16], strides = [1, 1]} : vector<2x64xf32> to vector<2x16xf32>
    %234 = math.tanh %233 : vector<2x16xf32>
    %235 = vector.extract_strided_slice %232 {offsets = [0, 0], sizes = [2, 16], strides = [1, 1]} : vector<2x48xf32> to vector<2x16xf32>
    %236 = vector.extract_strided_slice %232 {offsets = [0, 16], sizes = [2, 16], strides = [1, 1]} : vector<2x48xf32> to vector<2x16xf32>
    %237 = vector.extract_strided_slice %232 {offsets = [0, 32], sizes = [2, 16], strides = [1, 1]} : vector<2x48xf32> to vector<2x16xf32>
    %238 = arith.mulf %236, %222 : vector<2x16xf32>
    %239 = arith.mulf %235, %234 : vector<2x16xf32>
    %240 = arith.addf %238, %239 : vector<2x16xf32>
    %241 = math.tanh %240 : vector<2x16xf32>
    %242 = arith.mulf %237, %241 : vector<2x16xf32>
    %cst_43 = arith.constant dense<0.000000e+00> : vector<2x64xf32>
    %243 = tpu.matmul %242, %168, %cst_43 {dimension_numbers = #tpu.dot_dimension_numbers<[1], [0], [0], [1], [0, 0, 1, 1], [], []>} : vector<2x16xf32>, vector<16x64xf32>, vector<2x64xf32> -> vector<2x64xf32>
    %244 = arith.addf %167, %243 : vector<2x64xf32>
    %245 = vector.extract_strided_slice %244 {offsets = [0, 0], sizes = [2, 48], strides = [1, 1]} : vector<2x64xf32> to vector<2x48xf32>
    %246 = arith.negf %245 : vector<2x48xf32>
    %247 = math.exp %246 : vector<2x48xf32>
    %cst_44 = arith.constant 1.000000e+00 : f32
    %248 = vector.broadcast %cst_44 : f32 to vector<2x48xf32>
    %249 = arith.addf %248, %247 : vector<2x48xf32>
    %250 = arith.divf %248, %249 : vector<2x48xf32>
    %251 = vector.extract_strided_slice %244 {offsets = [0, 48], sizes = [2, 16], strides = [1, 1]} : vector<2x64xf32> to vector<2x16xf32>
    %252 = math.tanh %251 : vector<2x16xf32>
    %253 = vector.extract_strided_slice %250 {offsets = [0, 0], sizes = [2, 16], strides = [1, 1]} : vector<2x48xf32> to vector<2x16xf32>
    %254 = vector.extract_strided_slice %250 {offsets = [0, 16], sizes = [2, 16], strides = [1, 1]} : vector<2x48xf32> to vector<2x16xf32>
    %255 = vector.extract_strided_slice %250 {offsets = [0, 32], sizes = [2, 16], strides = [1, 1]} : vector<2x48xf32> to vector<2x16xf32>
    %256 = arith.mulf %254, %240 : vector<2x16xf32>
    %257 = arith.mulf %253, %252 : vector<2x16xf32>
    %258 = arith.addf %256, %257 : vector<2x16xf32>
    %259 = math.tanh %258 : vector<2x16xf32>
    %260 = arith.mulf %255, %259 : vector<2x16xf32>
    %cst_45 = arith.constant dense<0.000000e+00> : vector<2x64xf32>
    %261 = tpu.matmul %260, %168, %cst_45 {dimension_numbers = #tpu.dot_dimension_numbers<[1], [0], [0], [1], [0, 0, 1, 1], [], []>} : vector<2x16xf32>, vector<16x64xf32>, vector<2x64xf32> -> vector<2x64xf32>
    %262 = arith.addf %167, %261 : vector<2x64xf32>
    %263 = vector.extract_strided_slice %262 {offsets = [0, 0], sizes = [2, 48], strides = [1, 1]} : vector<2x64xf32> to vector<2x48xf32>
    %264 = arith.negf %263 : vector<2x48xf32>
    %265 = math.exp %264 : vector<2x48xf32>
    %cst_46 = arith.constant 1.000000e+00 : f32
    %266 = vector.broadcast %cst_46 : f32 to vector<2x48xf32>
    %267 = arith.addf %266, %265 : vector<2x48xf32>
    %268 = arith.divf %266, %267 : vector<2x48xf32>
    %269 = vector.extract_strided_slice %262 {offsets = [0, 48], sizes = [2, 16], strides = [1, 1]} : vector<2x64xf32> to vector<2x16xf32>
    %270 = math.tanh %269 : vector<2x16xf32>
    %271 = vector.extract_strided_slice %268 {offsets = [0, 0], sizes = [2, 16], strides = [1, 1]} : vector<2x48xf32> to vector<2x16xf32>
    %272 = vector.extract_strided_slice %268 {offsets = [0, 16], sizes = [2, 16], strides = [1, 1]} : vector<2x48xf32> to vector<2x16xf32>
    %273 = vector.extract_strided_slice %268 {offsets = [0, 32], sizes = [2, 16], strides = [1, 1]} : vector<2x48xf32> to vector<2x16xf32>
    %274 = arith.mulf %272, %258 : vector<2x16xf32>
    %275 = arith.mulf %271, %270 : vector<2x16xf32>
    %276 = arith.addf %274, %275 : vector<2x16xf32>
    %277 = math.tanh %276 : vector<2x16xf32>
    %278 = arith.mulf %273, %277 : vector<2x16xf32>
    %cst_47 = arith.constant dense<0.000000e+00> : vector<2x64xf32>
    %279 = tpu.matmul %278, %168, %cst_47 {dimension_numbers = #tpu.dot_dimension_numbers<[1], [0], [0], [1], [0, 0, 1, 1], [], []>} : vector<2x16xf32>, vector<16x64xf32>, vector<2x64xf32> -> vector<2x64xf32>
    %280 = arith.addf %167, %279 : vector<2x64xf32>
    %281 = vector.extract_strided_slice %280 {offsets = [0, 0], sizes = [2, 48], strides = [1, 1]} : vector<2x64xf32> to vector<2x48xf32>
    %282 = arith.negf %281 : vector<2x48xf32>
    %283 = math.exp %282 : vector<2x48xf32>
    %cst_48 = arith.constant 1.000000e+00 : f32
    %284 = vector.broadcast %cst_48 : f32 to vector<2x48xf32>
    %285 = arith.addf %284, %283 : vector<2x48xf32>
    %286 = arith.divf %284, %285 : vector<2x48xf32>
    %287 = vector.extract_strided_slice %280 {offsets = [0, 48], sizes = [2, 16], strides = [1, 1]} : vector<2x64xf32> to vector<2x16xf32>
    %288 = math.tanh %287 : vector<2x16xf32>
    %289 = vector.extract_strided_slice %286 {offsets = [0, 0], sizes = [2, 16], strides = [1, 1]} : vector<2x48xf32> to vector<2x16xf32>
    %290 = vector.extract_strided_slice %286 {offsets = [0, 16], sizes = [2, 16], strides = [1, 1]} : vector<2x48xf32> to vector<2x16xf32>
    %291 = vector.extract_strided_slice %286 {offsets = [0, 32], sizes = [2, 16], strides = [1, 1]} : vector<2x48xf32> to vector<2x16xf32>
    %292 = arith.mulf %290, %276 : vector<2x16xf32>
    %293 = arith.mulf %289, %288 : vector<2x16xf32>
    %294 = arith.addf %292, %293 : vector<2x16xf32>
    %295 = math.tanh %294 : vector<2x16xf32>
    %296 = arith.mulf %291, %295 : vector<2x16xf32>
    %cst_49 = arith.constant dense<0.000000e+00> : vector<2x64xf32>
    %297 = tpu.matmul %296, %168, %cst_49 {dimension_numbers = #tpu.dot_dimension_numbers<[1], [0], [0], [1], [0, 0, 1, 1], [], []>} : vector<2x16xf32>, vector<16x64xf32>, vector<2x64xf32> -> vector<2x64xf32>
    %298 = arith.addf %167, %297 : vector<2x64xf32>
    %299 = vector.extract_strided_slice %298 {offsets = [0, 0], sizes = [2, 48], strides = [1, 1]} : vector<2x64xf32> to vector<2x48xf32>
    %300 = arith.negf %299 : vector<2x48xf32>
    %301 = math.exp %300 : vector<2x48xf32>
    %cst_50 = arith.constant 1.000000e+00 : f32
    %302 = vector.broadcast %cst_50 : f32 to vector<2x48xf32>
    %303 = arith.addf %302, %301 : vector<2x48xf32>
    %304 = arith.divf %302, %303 : vector<2x48xf32>
    %305 = vector.extract_strided_slice %298 {offsets = [0, 48], sizes = [2, 16], strides = [1, 1]} : vector<2x64xf32> to vector<2x16xf32>
    %306 = math.tanh %305 : vector<2x16xf32>
    %307 = vector.extract_strided_slice %304 {offsets = [0, 0], sizes = [2, 16], strides = [1, 1]} : vector<2x48xf32> to vector<2x16xf32>
    %308 = vector.extract_strided_slice %304 {offsets = [0, 16], sizes = [2, 16], strides = [1, 1]} : vector<2x48xf32> to vector<2x16xf32>
    %309 = vector.extract_strided_slice %304 {offsets = [0, 32], sizes = [2, 16], strides = [1, 1]} : vector<2x48xf32> to vector<2x16xf32>
    %310 = arith.mulf %308, %294 : vector<2x16xf32>
    %311 = arith.mulf %307, %306 : vector<2x16xf32>
    %312 = arith.addf %310, %311 : vector<2x16xf32>
    %313 = math.tanh %312 : vector<2x16xf32>
    %314 = arith.mulf %309, %313 : vector<2x16xf32>
    %315 = tpu.concatenate %162, %188, %206, %224, %242, %260, %278, %296, %314 in 1 : vector<2x128xf32>, vector<2x16xf32>, vector<2x16xf32>, vector<2x16xf32>, vector<2x16xf32>, vector<2x16xf32>, vector<2x16xf32>, vector<2x16xf32>, vector<2x16xf32> -> vector<2x256xf32>
    %c0_51 = arith.constant 0 : index
    %c0_52 = arith.constant 0 : index
    %316 = vector.load %arg7[%c0_51, %c0_52] : memref<2x256xf32, #tpu.memory_space<vmem>>, vector<2x256xf32>
    tpu.vector_store %arg7[%c0_51, %c0_52], %315 {strides = array<i32>} : memref<2x256xf32, #tpu.memory_space<vmem>>, vector<2x256xf32>,
    return
  }
}

</mosaic_0001>

<bundles_post_ra>
// kernel: recurrent_autoencoder_forward.1
= control target key start
LH: loop header
LB: loop body
LE: loop exit
PB: predicated region body
PF: predicated region fallthrough
CT: control target
= control target key end

     0   :  { %12 = vsyncpa [#allocation3], 0  ;;  %s2828_s0 = inlined_call_operand.vmem [shape: f32[16,16], index: 0, kind: input, shape index: {}]   ;;  %s2829_s1 = inlined_call_operand.vmem [shape: f32[16,128], index: 1, kind: input, shape index: {}]   ;;  %s2830_s2 = inlined_call_operand.vmem [shape: f32[32,128], index: 2, kind: input, shape index: {}]   ;;  %s2831_s3 = inlined_call_operand.vmem [shape: f32[1,128], index: 3, kind: input, shape index: {}]   ;;  %s2832_s4 = inlined_call_operand.hbm [shape: f32[32,64], index: 4, kind: input, shape index: {}]   ;;  %s2833_s5 = inlined_call_operand.hbm [shape: f32[16,64], index: 5, kind: input, shape index: {}]   ;;  %s2834_s6 = inlined_call_operand.vmem [shape: f32[1,64], index: 6, kind: input, shape index: {}]   ;;  %s2835_s7 = inlined_call_operand.vmem [shape: f32[2,256], index: 7, kind: output, shape index: {}]  }
   0x1   :  { %13 = vsyncpa [#allocation5], 0  ;;  %s2489_s24 = smov [#allocation2]   ;;  %s2441_s28 = scalar_lea.hbm %s2832_s4, 512 }
   0x2   :  { %s27_s25 = sshll.u32 %s2489_s24, 4  ;;  %p2442_p0 = scmp.ne.s32.totalorder %s2832_s4, %s2441_s28  ;;  %s28_s25 = int_to_ptr.vmem [resolvable:$true] %s27_s25 }
   0x3   :  { %p2445_p1 = scmp.lt.u32.totalorder %s2441_s28, %s2832_s4 }
   0x5   :  { %p2447_p2 = pnand %p2445_p1, %p2442_p0 }
   0x7   :  { %2450 = shalt.err (!%p2447_p2)
}
   0x8   :  { %s2451_s10 = scalar_lea.vmem %s28_s25, 512  ;;  %p2456_p4 = scmp.lt.s32.totalorder %s28_s25, %s28_s25 }
   0x9   :  { %p2452_p3 = scmp.ne.s32.totalorder %s28_s25, %s2451_s10  ;;  %p2457_p5 = scmp.lt.s32.totalorder %s2451_s10, %s2451_s10 }
   0xb   :  { %p2458_p6 = por %p2457_p5, %p2456_p4 }
   0xd   :  { %p2459_p7 = pnand %p2458_p6, %p2452_p3 }
   0xf   :  { %2462 = shalt.err (!%p2459_p7)
}
  0x10   :  { %s2490_s11 = smov 128   ;;  %s2491_s12 = smov 8  }
  0x11   :  { %33 = dma.hbm_to_vmem [thread:$0]  %s2832_s4, 512, %s28_s25, [#allocation3], %s2490_s11, %s2490_s11, %s2491_s12  }
  0x12   :  { %s2492_s15 = smov [#allocation4]   ;;  %s2463_s19 = scalar_lea.hbm %s2833_s5, 256 }
  0x13   :  { %s39_s16 = sshll.u32 %s2492_s15, 4  ;;  %p2464_p8 = scmp.ne.s32.totalorder %s2833_s5, %s2463_s19  ;;  %s40_s16 = int_to_ptr.vmem [resolvable:$true] %s39_s16 }
  0x14   :  { %p2467_p9 = scmp.lt.u32.totalorder %s2463_s19, %s2833_s5 }
  0x16   :  { %p2469_p10 = pnand %p2467_p9, %p2464_p8 }
  0x18   :  { %2472 = shalt.err (!%p2469_p10)
}
  0x19   :  { %s2473_s24 = scalar_lea.vmem %s40_s16, 256  ;;  %p2478_p12 = scmp.lt.s32.totalorder %s40_s16, %s40_s16 }
  0x1a   :  { %p2474_p11 = scmp.ne.s32.totalorder %s40_s16, %s2473_s24  ;;  %p2479_p13 = scmp.lt.s32.totalorder %s2473_s24, %s2473_s24 }
  0x1c   :  { %p2480_p0 = por %p2479_p13, %p2478_p12 }
  0x1e   :  { %p2481_p1 = pnand %p2480_p0, %p2474_p11 }
  0x20   :  { %2484 = shalt.err (!%p2481_p1)
}
  0x21   :  { %45 = dma.hbm_to_vmem [thread:$0]  %s2833_s5, 256, %s40_s16, [#allocation5], %s2490_s11, %s2490_s11, %s2491_s12  }
  0x22   :  { %2485 = dma.done.wait [#allocation3], 512  }
  0x23   :  { %2486 = vsyncadd [#allocation3], 4294966784 }
  0x24   :  { %2487 = dma.done.wait [#allocation5], 256  }
  0x25   :  { %2488 = vsyncadd [#allocation5], 4294967040  ;;  %v2493_v0 = vmov 0.0|0.0   ;;  %vm2494_vm0 = vmmov 0   ;;  %v2495_v1 = vmov 0.0   ;;  %vm65_vm1 = vcmask 130048  }
  0x26   :  { %2220 = vmatprep.subr.bf16.mxu1 %v2493_v0  ;;  %2069 = vmatprep.mubr.msk.f32.mxu1 %vm2494_vm0, %v2495_v1  ;;  %v56_v2 = vld [vmem:[%s2829_s1] sm:$0xff]  ;;  %v57_v3 = vld [vmem:[%s2829_s1 + $0x8] sm:$0xff]  ;;  %v149_v9 = vld [vmem:[%s2830_s2 + $0x10] sm:$0xff]  ;;  %s2496_s17 = smov 32   ;;  %vm151_vm2 = vcmask 261120   ;;  %s2498_s20 = smov 80  }
  0x27   :  { %v147_v4 = vld [vmem:[%s2830_s2] sm:$0xff]  ;;  %v2216_v5 = vpack.c.bf16 %v57_v3, %v56_v2  ;;  %v148_v6 = vld [vmem:[%s2830_s2 + $0x8] sm:$0xff]  ;;  %v150_v10 = vld [vmem:[%s2830_s2 + $0x18] sm:$0xff]  ;;  %s2500_s21 = smov 96   ;;  %s2501_s22 = smov 48   ;;  %vm1917_vm3 = vcmask 392192  }
  0x28   :  { %v54_v7 = vld [vmem:[%s2828_s0] sm:$0xff]  ;;  %v2586_v8 = vpack.c.bf16 %v148_v6, %v147_v4  ;;  %v55_v11 = vld [vmem:[%s2828_s0 + $0x8] sm:$0xff]  ;;  %v2599_v12 = vpack.c.bf16 %v150_v10, %v149_v9  ;;  %s2502_s23 = smov 112   ;;  %vm1919_vm4 = vcmask 523264   ;;  %vm1921_vm5 = vcmask 654336  }
  0x29   :  { %2058 = vmatprep.mubr.msk.f32.mxu0 %vm65_vm1, %v54_v7  ;;  %2217 = vmatprep.subr.bf16.mxu0 %v2216_v5  ;;  %v1946_v13 = vld [vmem:[%s2831_s3] ss:$0 sm:$0xff]  ;;  %s2497_s3 = smov 64   ;;  %vm1923_vm6 = vcmask 785408   ;;  %vm1925_vm7 = vcmask 916480  }
  0x2a   :  { %2222 = vmatpush3.bf16.msra.mxu1 %v2586_v8  ;;  %2219 = vmatpush3.bf16.msra.mxu0 %v2216_v5 }
  0x2b   :  { %2223 = vmatprep.subr.bf16.mxu1 %v2493_v0  ;;  %2226 = vmatprep.subr.bf16.mxu0 %v2493_v0 }
  0x2d   :  { %2059 = vmatmul.mubr.msk.f32.vlgmr.msra.gmra.mrb[0].mxu0 %vm65_vm1, %v55_v11 }
  0x2e   :  { %2225 = vmatpush3.bf16.msra.mxu1 %v2599_v12  ;;  %2228 = vmatpush3.bf16.msra.mxu0 %v2586_v8 }
  0x2f   :  { %2229 = vmatprep.subr.bf16.mxu0 %v2493_v0  ;;  %2080 = vmatprep.mubr.msk.f32.mxu0 %vm2494_vm0, %v2495_v1 }
  0x30   :  { %2232 = vmatprep.subr.bf16.mxu1 %v2493_v0 }
  0x31   :  { %2070 = vmatmul.mubr.f32.vlgmr.msra.gmra.mrb[0].mxu1 %v2495_v1 }
  0x32   :  { %2231 = vmatpush3.bf16.msra.mxu0 %v2599_v12  ;;  %2234 = vmatpush3.bf16.msra.mxu1 %v2586_v8 }
  0x33   :  { %2235 = vmatprep.subr.bf16.mxu1 %v2493_v0  ;;  %2091 = vmatprep.mubr.msk.f32.mxu1 %vm2494_vm0, %v2495_v1 }
  0x34   :  { %2238 = vmatprep.subr.bf16.mxu0 %v2493_v0 }
  0x36   :  { %2237 = vmatpush3.bf16.msra.mxu1 %v2599_v12 }
  0x37   :  { %2244 = vmatprep.subr.bf16.mxu1 %v2493_v0 }
 0x100   :  { %v2060_v14 = vpop.f32.mrb[0].mxu0 }
 0x101   :  { %v2622_v15 = vadd.f32 %v2060_v14, %v1946_v13  ;;  %v138_v16 = vpop.f32.mrb[1].mxu0 }
 0x102   :  { %v2624_v17 = vadd.f32 %v1946_v13, %v138_v16 }
 0x104   :  { %v221_v18 = vpop.f32.mrb[0].mxu1 }
 0x105   :  { %v225_v19 = vadd.f32 %v221_v18, %v2624_v17  ;;  %v2071_v20 = vpop.f32.mrb[1].mxu1 }
 0x107   :  { %2313 = vtanh.f32 %v225_v19  ;;  %v1949_v22 = vmul.f32 -1.442695, %v225_v19 }
 0x109   :  { %2315 = vpow2.f32 %v1949_v22 }
 0x111   :  { %v2314_v21 = vpop.eup %2313 }
 0x112   :  { %235 = vrot.lane.b32.xlu0 %v2314_v21, %s2496_s17 }
 0x113   :  { %v2316_v23 = vpop.eup %2315 }
 0x114   :  { %v229_v24 = vadd.f32 1.0, %v2316_v23 }
 0x116   :  { %2317 = vrcp.f32 %v229_v24 }
 0x120   :  { %v2318_v25 = vpop.eup %2317 }
 0x121   :  { %v233_v28 = vmul.f32 0.0, %v2318_v25 }
 0x184   :  { %v236_v26 = vpop.permute.xlu0 %235 }
 0x185   :  { %v238_v27 = vmul.f32 %v2318_v25, %v236_v26 }
 0x187   :  { %240 = vrot.lane.b32.xlu0 %v238_v27, %s2496_s17 }
 0x1f9   :  { %v241_v29 = vpop.permute.xlu0 %240 }
 0x1fa   :  { %v243_v30 = vadd.f32 %v241_v29, %v233_v28 }
 0x1fc   :  { %2319 = vtanh.f32 %v243_v30  ;;  %v337_v46 = vrot.slane %v243_v30, 6 }
 0x206   :  { %v2320_v31 = vpop.eup %2319 }
 0x207   :  { %246 = vrot.lane.b32.xlu1 %v2320_v31, %s2496_s17 }
 0x279   :  { %v247_v32 = vpop.permute.xlu1 %246 }
 0x27a   :  { %v249_v33 = vmul.f32 %v2318_v25, %v247_v32 }
 0x27c   :  { %251 = vrot.lane.b32.xlu1 %v249_v33, %s2497_s3 }
 0x2ee   :  { %v252_v34 = vpop.permute.xlu1 %251 }
 0x2ef   :  { %2081 = vmatmul.mubr.msk.f32.vlgmr.msra.gmra.mrb[2].mxu0 %vm151_vm2, %v252_v34 }
 0x2f0   :  { %2240 = vmatpush3.bf16.msra.mxu0 %v2586_v8  ;;  %2102 = vmatprep.mubr.msk.f32.mxu0 %vm2494_vm0, %v2495_v1 }
 0x2f1   :  { %2241 = vmatprep.subr.bf16.mxu0 %v2493_v0 }
 0x2f4   :  { %2243 = vmatpush3.bf16.msra.mxu0 %v2599_v12 }
 0x2f5   :  { %2250 = vmatprep.subr.bf16.mxu0 %v2493_v0 }
 0x3c2   :  { %v321_v35 = vpop.f32.mrb[2].mxu0 }
 0x3c3   :  { %v326_v36 = vrot.slane %v321_v35, 6  ;;  %v2082_v37 = vpop.f32.mrb[3].mxu0 }
 0x3c5   :  { %v328_v38 = vadd.f32 %v326_v36, %v2624_v17 }
 0x3c7   :  { %2321 = vtanh.f32 %v328_v38  ;;  %v1951_v40 = vmul.f32 -1.442695, %v328_v38 }
 0x3c9   :  { %2323 = vpow2.f32 %v1951_v40 }
 0x3d1   :  { %v2322_v39 = vpop.eup %2321 }
 0x3d2   :  { %341 = vrot.lane.b32.xlu0 %v2322_v39, %s2496_s17 }
 0x3d3   :  { %v2324_v41 = vpop.eup %2323 }
 0x3d4   :  { %v332_v42 = vadd.f32 1.0, %v2324_v41 }
 0x3d6   :  { %2325 = vrcp.f32 %v332_v42 }
 0x3e0   :  { %v2326_v43 = vpop.eup %2325 }
 0x3e1   :  { %v339_v47 = vmul.f32 %v2326_v43, %v337_v46 }
 0x444   :  { %v342_v44 = vpop.permute.xlu0 %341 }
 0x445   :  { %v344_v45 = vmul.f32 %v2326_v43, %v342_v44 }
 0x447   :  { %346 = vrot.lane.b32.xlu1 %v344_v45, %s2496_s17 }
 0x4b9   :  { %v347_v48 = vpop.permute.xlu1 %346 }
 0x4ba   :  { %v349_v49 = vadd.f32 %v347_v48, %v339_v47 }
 0x4bc   :  { %2327 = vtanh.f32 %v349_v49  ;;  %v444_v4 = vrot.slane %v349_v49, 6 }
 0x4c6   :  { %v2328_v50 = vpop.eup %2327 }
 0x4c7   :  { %352 = vrot.lane.b32.xlu0 %v2328_v50, %s2496_s17 }
 0x539   :  { %v353_v51 = vpop.permute.xlu0 %352 }
 0x53a   :  { %v355_v52 = vmul.f32 %v2326_v43, %v353_v51 }
 0x53c   :  { %v357_v53 = vrot.slane %v355_v52, 2 }
 0x53e   :  { %358 = vrot.lane.b32.xlu1 %v357_v53, %s2497_s3 }
 0x5b0   :  { %v359_v54 = vpop.permute.xlu1 %358 }
 0x5b1   :  { %2092 = vmatmul.mubr.msk.f32.vlgmr.msra.gmra.mrb[2].mxu1 %vm151_vm2, %v359_v54 }
 0x5b2   :  { %2246 = vmatpush3.bf16.msra.mxu1 %v2586_v8  ;;  %2113 = vmatprep.mubr.msk.f32.mxu1 %vm2494_vm0, %v2495_v1 }
 0x5b3   :  { %2247 = vmatprep.subr.bf16.mxu1 %v2493_v0 }
 0x5b6   :  { %2249 = vmatpush3.bf16.msra.mxu1 %v2599_v12 }
 0x5b7   :  { %2256 = vmatprep.subr.bf16.mxu1 %v2493_v0 }
 0x684   :  { %v428_v55 = vpop.f32.mrb[2].mxu1 }
 0x685   :  { %v433_v56 = vrot.slane %v428_v55, 4  ;;  %v2093_v57 = vpop.f32.mrb[3].mxu1 }
 0x687   :  { %v435_v58 = vadd.f32 %v433_v56, %v2624_v17 }
 0x689   :  { %2329 = vtanh.f32 %v435_v58  ;;  %v1953_v60 = vmul.f32 -1.442695, %v435_v58 }
 0x68b   :  { %2331 = vpow2.f32 %v1953_v60 }
 0x693   :  { %v2330_v59 = vpop.eup %2329 }
 0x694   :  { %448 = vrot.lane.b32.xlu0 %v2330_v59, %s2496_s17 }
 0x695   :  { %v2332_v61 = vpop.eup %2331 }
 0x696   :  { %v439_v62 = vadd.f32 1.0, %v2332_v61 }
 0x698   :  { %2333 = vrcp.f32 %v439_v62 }
 0x6a2   :  { %v2334_v63 = vpop.eup %2333 }
 0x6a3   :  { %v446_v5 = vmul.f32 %v2334_v63, %v444_v4 }
 0x706   :  { %v449_v2 = vpop.permute.xlu0 %448 }
 0x707   :  { %v451_v3 = vmul.f32 %v2334_v63, %v449_v2 }
 0x709   :  { %453 = vrot.lane.b32.xlu1 %v451_v3, %s2496_s17 }
 0x77b   :  { %v454_v6 = vpop.permute.xlu1 %453 }
 0x77c   :  { %v456_v7 = vadd.f32 %v454_v6, %v446_v5 }
 0x77e   :  { %2335 = vtanh.f32 %v456_v7  ;;  %v551_v28 = vrot.slane %v456_v7, 6 }
 0x788   :  { %v2336_v9 = vpop.eup %2335 }
 0x789   :  { %459 = vrot.lane.b32.xlu0 %v2336_v9, %s2496_s17 }
 0x7fb   :  { %v460_v10 = vpop.permute.xlu0 %459 }
 0x7fc   :  { %v462_v11 = vmul.f32 %v2334_v63, %v460_v10 }
 0x7fe   :  { %v464_v13 = vrot.slane %v462_v11, 4 }
 0x800   :  { %465 = vrot.lane.b32.xlu1 %v464_v13, %s2497_s3 }
 0x872   :  { %v466_v14 = vpop.permute.xlu1 %465 }
 0x873   :  { %2103 = vmatmul.mubr.msk.f32.vlgmr.msra.gmra.mrb[4].mxu0 %vm151_vm2, %v466_v14 }
 0x874   :  { %2252 = vmatpush3.bf16.msra.mxu0 %v2586_v8  ;;  %2124 = vmatprep.mubr.msk.f32.mxu0 %vm2494_vm0, %v2495_v1 }
 0x875   :  { %2253 = vmatprep.subr.bf16.mxu0 %v2493_v0 }
 0x878   :  { %2255 = vmatpush3.bf16.msra.mxu0 %v2599_v12 }
 0x879   :  { %2262 = vmatprep.subr.bf16.mxu0 %v2493_v0 }
 0x946   :  { %v535_v16 = vpop.f32.mrb[4].mxu0 }
 0x947   :  { %v540_v18 = vrot.slane %v535_v16, 2  ;;  %v2104_v19 = vpop.f32.mrb[5].mxu0 }
 0x949   :  { %v542_v20 = vadd.f32 %v540_v18, %v2624_v17 }
 0x94b   :  { %2337 = vtanh.f32 %v542_v20  ;;  %v1955_v22 = vmul.f32 -1.442695, %v542_v20 }
 0x94d   :  { %2339 = vpow2.f32 %v1955_v22 }
 0x955   :  { %v2338_v21 = vpop.eup %2337 }
 0x956   :  { %555 = vrot.lane.b32.xlu0 %v2338_v21, %s2496_s17 }
 0x957   :  { %v2340_v23 = vpop.eup %2339 }
 0x958   :  { %v546_v24 = vadd.f32 1.0, %v2340_v23 }
 0x95a   :  { %2341 = vrcp.f32 %v546_v24 }
 0x964   :  { %v2342_v25 = vpop.eup %2341 }
 0x965   :  { %v553_v29 = vmul.f32 %v2342_v25, %v551_v28 }
 0x9c8   :  { %v556_v26 = vpop.permute.xlu0 %555 }
 0x9c9   :  { %v558_v27 = vmul.f32 %v2342_v25, %v556_v26 }
 0x9cb   :  { %560 = vrot.lane.b32.xlu1 %v558_v27, %s2496_s17 }
 0xa3d   :  { %v561_v30 = vpop.permute.xlu1 %560 }
 0xa3e   :  { %v563_v31 = vadd.f32 %v561_v30, %v553_v29 }
 0xa40   :  { %2343 = vtanh.f32 %v563_v31  ;;  %v655_v46 = vrot.slane %v563_v31, 6 }
 0xa4a   :  { %v2344_v17 = vpop.eup %2343 }
 0xa4b   :  { %566 = vrot.lane.b32.xlu0 %v2344_v17, %s2496_s17 }
 0xabd   :  { %v567_v32 = vpop.permute.xlu0 %566 }
 0xabe   :  { %v569_v33 = vmul.f32 %v2342_v25, %v567_v32 }
 0xac0   :  { %v571_v34 = vrot.slane %v569_v33, 6 }
 0xac2   :  { %572 = vrot.lane.b32.xlu1 %v571_v34, %s2497_s3 }
 0xb34   :  { %v573_v35 = vpop.permute.xlu1 %572 }
 0xb35   :  { %2114 = vmatmul.mubr.msk.f32.vlgmr.msra.gmra.mrb[4].mxu1 %vm151_vm2, %v573_v35 }
 0xb36   :  { %2258 = vmatpush3.bf16.msra.mxu1 %v2586_v8  ;;  %2135 = vmatprep.mubr.msk.f32.mxu1 %vm2494_vm0, %v2495_v1 }
 0xb37   :  { %2259 = vmatprep.subr.bf16.mxu1 %v2493_v0 }
 0xb3a   :  { %2261 = vmatpush3.bf16.msra.mxu1 %v2599_v12 }
 0xb3b   :  { %2268 = vmatprep.subr.bf16.mxu1 %v2493_v0 }
 0xc08   :  { %v642_v36 = vpop.f32.mrb[4].mxu1 }
 0xc09   :  { %v646_v37 = vadd.f32 %v642_v36, %v2622_v15  ;;  %v2115_v38 = vpop.f32.mrb[5].mxu1 }
 0xc0b   :  { %2345 = vtanh.f32 %v646_v37  ;;  %v1957_v40 = vmul.f32 -1.442695, %v646_v37 }
 0xc0d   :  { %2347 = vpow2.f32 %v1957_v40 }
 0xc15   :  { %v2346_v39 = vpop.eup %2345 }
 0xc16   :  { %659 = vrot.lane.b32.xlu0 %v2346_v39, %s2496_s17 }
 0xc17   :  { %v2348_v41 = vpop.eup %2347 }
 0xc18   :  { %v650_v42 = vadd.f32 1.0, %v2348_v41 }
 0xc1a   :  { %2349 = vrcp.f32 %v650_v42 }
 0xc24   :  { %v2350_v43 = vpop.eup %2349 }
 0xc25   :  { %v657_v47 = vmul.f32 %v2350_v43, %v655_v46 }
 0xc88   :  { %v660_v44 = vpop.permute.xlu0 %659 }
 0xc89   :  { %v662_v45 = vmul.f32 %v2350_v43, %v660_v44 }
 0xc8b   :  { %664 = vrot.lane.b32.xlu1 %v662_v45, %s2496_s17 }
 0xcfd   :  { %v665_v48 = vpop.permute.xlu1 %664 }
 0xcfe   :  { %v667_v49 = vadd.f32 %v665_v48, %v657_v47  ;;  %v1000_v48 = vld [vmem:[#allocation2 + $0x8] sm:$0xff] }
 0xd00   :  { %2351 = vtanh.f32 %v667_v49 }
 0xd0a   :  { %v2352_v50 = vpop.eup %2351 }
 0xd0b   :  { %670 = vrot.lane.b32.xlu0 %v2352_v50, %s2496_s17 }
 0xd7d   :  { %v671_v51 = vpop.permute.xlu0 %670 }
 0xd7e   :  { %v673_v52 = vmul.f32 %v2350_v43, %v671_v51  ;;  %v1002_v51 = vld [vmem:[#allocation2 + $0x18] sm:$0xff] }
 0xd80   :  { %675 = vrot.lane.b32.xlu1 %v673_v52, %s2497_s3  ;;  %v1085_v52 = vld [vmem:[#allocation4] sm:$0xff] }
 0xdf2   :  { %v676_v53 = vpop.permute.xlu1 %675 }
 0xdf3   :  { %2125 = vmatmul.mubr.msk.f32.vlgmr.msra.gmra.mrb[6].mxu0 %vm151_vm2, %v676_v53  ;;  %v1086_v53 = vld [vmem:[#allocation4 + $0x8] sm:$0xff] }
 0xdf4   :  { %2264 = vmatpush3.bf16.msra.mxu0 %v2586_v8  ;;  %2146 = vmatprep.mubr.msk.f32.mxu0 %vm2494_vm0, %v2495_v1 }
 0xdf5   :  { %2265 = vmatprep.subr.bf16.mxu0 %v2493_v0 }
 0xdf8   :  { %2267 = vmatpush3.bf16.msra.mxu0 %v2599_v12  ;;  %v761_v12 = vrot.slane %v667_v49, 6  ;;  %v1001_v49 = vld [vmem:[#allocation2 + $0x10] sm:$0xff] }
 0xdf9   :  { %2274 = vmatprep.subr.bf16.mxu0 %v2493_v0 }
 0xec6   :  { %v745_v54 = vpop.f32.mrb[6].mxu0 }
 0xec7   :  { %v750_v55 = vrot.slane %v745_v54, 6  ;;  %v2126_v56 = vpop.f32.mrb[7].mxu0  ;;  %v2705_v54 = vpack.c.bf16 %v1086_v53, %v1085_v52 }
 0xec9   :  { %v752_v57 = vadd.f32 %v750_v55, %v2622_v15  ;;  %v2272_v55 = vpack.c.bf16 %v1002_v51, %v1001_v49 }
 0xecb   :  { %2353 = vtanh.f32 %v752_v57  ;;  %v1959_v59 = vmul.f32 -1.442695, %v752_v57 }
 0xecd   :  { %2355 = vpow2.f32 %v1959_v59 }
 0xed5   :  { %v2354_v58 = vpop.eup %2353 }
 0xed6   :  { %765 = vrot.lane.b32.xlu0 %v2354_v58, %s2496_s17 }
 0xed7   :  { %v2356_v8 = vpop.eup %2355 }
 0xed8   :  { %v756_v60 = vadd.f32 1.0, %v2356_v8 }
 0xeda   :  { %2357 = vrcp.f32 %v756_v60 }
 0xee4   :  { %v2358_v61 = vpop.eup %2357 }
 0xee5   :  { %v763_v2 = vmul.f32 %v2358_v61, %v761_v12 }
 0xf48   :  { %v766_v62 = vpop.permute.xlu0 %765 }
 0xf49   :  { %v768_v63 = vmul.f32 %v2358_v61, %v766_v62  ;;  %v1964_v62 = vld [vmem:[%s2834_s6] ss:$0 sm:$0xff]  ;;  %s2499_s6 = smov 16  }
 0xf4b   :  { %770 = vrot.lane.b32.xlu1 %v768_v63, %s2496_s17 }
 0xfbd   :  { %v771_v3 = vpop.permute.xlu1 %770 }
 0xfbe   :  { %v773_v4 = vadd.f32 %v771_v3, %v763_v2 }
 0xfc0   :  { %2359 = vtanh.f32 %v773_v4  ;;  %v868_v25 = vrot.slane %v773_v4, 6 }
 0xfca   :  { %v2360_v5 = vpop.eup %2359 }
 0xfcb   :  { %776 = vrot.lane.b32.xlu0 %v2360_v5, %s2496_s17 }
0x103d   :  { %v777_v6 = vpop.permute.xlu0 %776 }
0x103e   :  { %v779_v7 = vmul.f32 %v2358_v61, %v777_v6 }
0x1040   :  { %v781_v9 = vrot.slane %v779_v7, 2 }
0x1042   :  { %782 = vrot.lane.b32.xlu1 %v781_v9, %s2497_s3 }
0x10b4   :  { %v783_v10 = vpop.permute.xlu1 %782 }
0x10b5   :  { %2136 = vmatmul.mubr.msk.f32.vlgmr.msra.gmra.mrb[6].mxu1 %vm151_vm2, %v783_v10 }
0x10b6   :  { %2157 = vmatprep.mubr.msk.f32.mxu1 %vm2494_vm0, %v2495_v1 }
0x1188   :  { %v852_v11 = vpop.f32.mrb[6].mxu1 }
0x1189   :  { %v857_v13 = vrot.slane %v852_v11, 4  ;;  %v2137_v14 = vpop.f32.mrb[7].mxu1 }
0x118b   :  { %v859_v16 = vadd.f32 %v857_v13, %v2622_v15 }
0x118d   :  { %2361 = vtanh.f32 %v859_v16  ;;  %v1961_v19 = vmul.f32 -1.442695, %v859_v16 }
0x118f   :  { %2363 = vpow2.f32 %v1961_v19 }
0x1197   :  { %v2362_v18 = vpop.eup %2361 }
0x1198   :  { %872 = vrot.lane.b32.xlu0 %v2362_v18, %s2496_s17 }
0x1199   :  { %v2364_v20 = vpop.eup %2363 }
0x119a   :  { %v863_v21 = vadd.f32 1.0, %v2364_v20 }
0x119c   :  { %2365 = vrcp.f32 %v863_v21 }
0x11a6   :  { %v2366_v22 = vpop.eup %2365 }
0x11a7   :  { %v870_v26 = vmul.f32 %v2366_v22, %v868_v25 }
0x120a   :  { %v873_v23 = vpop.permute.xlu0 %872 }
0x120b   :  { %v875_v24 = vmul.f32 %v2366_v22, %v873_v23 }
0x120d   :  { %877 = vrot.lane.b32.xlu1 %v875_v24, %s2496_s17 }
0x127f   :  { %v878_v27 = vpop.permute.xlu1 %877 }
0x1280   :  { %v880_v28 = vadd.f32 %v878_v27, %v870_v26 }
0x1282   :  { %2367 = vtanh.f32 %v880_v28  ;;  %v975_v44 = vrot.slane %v880_v28, 6 }
0x128c   :  { %v2368_v29 = vpop.eup %2367 }
0x128d   :  { %883 = vrot.lane.b32.xlu0 %v2368_v29, %s2496_s17 }
0x12ff   :  { %v884_v30 = vpop.permute.xlu0 %883 }
0x1300   :  { %v886_v31 = vmul.f32 %v2366_v22, %v884_v30 }
0x1302   :  { %v888_v17 = vrot.slane %v886_v31, 4 }
0x1304   :  { %889 = vrot.lane.b32.xlu1 %v888_v17, %s2497_s3 }
0x1376   :  { %v890_v32 = vpop.permute.xlu1 %889 }
0x1377   :  { %2147 = vmatmul.mubr.msk.f32.vlgmr.msra.gmra.mrb[8].mxu0 %vm151_vm2, %v890_v32 }
0x1378   :  { %2164 = vmatprep.mubr.msk.f32.mxu0 %vm2494_vm0, %v2495_v1  ;;  %2276 = vmatpush3.bf16.msra.mxu0 %v2705_v54 }
0x1379   :  { %2277 = vmatprep.subr.bf16.mxu0 %v2493_v0 }
0x137b   :  { %2165 = vmatmul.mubr.f32.vlgmr.msra.gmra.mrb[10].mxu0 %v2495_v1 }
0x137c   :  { %2279 = vmatpush3.bf16.msra.mxu0 %v2705_v54  ;;  %2171 = vmatprep.mubr.msk.f32.mxu0 %vm2494_vm0, %v2495_v1 }
0x137d   :  { %2283 = vmatprep.subr.bf16.mxu0 %v2493_v0 }
0x144a   :  { %v959_v33 = vpop.f32.mrb[8].mxu0 }
0x144b   :  { %v964_v34 = vrot.slane %v959_v33, 2  ;;  %v2148_v35 = vpop.f32.mrb[9].mxu0 }
0x144d   :  { %v966_v36 = vadd.f32 %v964_v34, %v2622_v15  ;;  %v999_v15 = vld [vmem:[#allocation2] sm:$0xff] }
0x144e   :  { %v2269_v50 = vpack.c.bf16 %v1000_v48, %v999_v15  ;;  %v1155_v60 = vpop.f32.mrb[10].mxu0 }
0x144f   :  { %2369 = vtanh.f32 %v966_v36  ;;  %v1963_v38 = vmul.f32 -1.442695, %v966_v36  ;;  %v2166_v61 = vpop.f32.mrb[11].mxu0 }
0x1450   :  { %2270 = vmatpush3.bf16.msra.mxu1 %v2269_v50 }
0x1451   :  { %2371 = vpow2.f32 %v1963_v38  ;;  %2271 = vmatprep.subr.bf16.mxu1 %v2493_v0 }
0x1454   :  { %2273 = vmatpush3.bf16.msra.mxu1 %v2272_v55 }
0x1455   :  { %2280 = vmatprep.subr.bf16.mxu1 %v2493_v0 }
0x1459   :  { %v2370_v37 = vpop.eup %2369 }
0x145a   :  { %979 = vrot.lane.b32.xlu0 %v2370_v37, %s2496_s17 }
0x145b   :  { %v2372_v39 = vpop.eup %2371 }
0x145c   :  { %v970_v40 = vadd.f32 1.0, %v2372_v39 }
0x145e   :  { %2373 = vrcp.f32 %v970_v40 }
0x1468   :  { %v2374_v41 = vpop.eup %2373 }
0x1469   :  { %v977_v45 = vmul.f32 %v2374_v41, %v975_v44 }
0x14cc   :  { %v980_v42 = vpop.permute.xlu0 %979 }
0x14cd   :  { %v982_v43 = vmul.f32 %v2374_v41, %v980_v42 }
0x14cf   :  { %984 = vrot.lane.b32.xlu1 %v982_v43, %s2496_s17 }
0x1541   :  { %v985_v46 = vpop.permute.xlu1 %984 }
0x1542   :  { %v987_v47 = vadd.f32 %v985_v46, %v977_v45 }
0x1544   :  { %2375 = vtanh.f32 %v987_v47 }
0x154e   :  { %v2376_v56 = vpop.eup %2375 }
0x154f   :  { %990 = vrot.lane.b32.xlu0 %v2376_v56, %s2496_s17 }
0x15c1   :  { %v991_v57 = vpop.permute.xlu0 %990 }
0x15c2   :  { %v2717_v58 = vmul.f32 %v2374_v41, %v991_v57 }
0x15c4   :  { %v1010_v59 = vrot.slane %v2717_v58, 6 }
0x15c6   :  { %1011 = vrot.lane.b32.xlu1 %v1010_v59, %s2497_s3 }
0x1638   :  { %v1012_v8 = vpop.permute.xlu1 %1011 }
0x1639   :  { %2158 = vmatmul.mubr.msk.f32.vlgmr.msra.gmra.mrb[8].mxu1 %vm151_vm2, %v1012_v8 }
0x163a   :  { %2282 = vmatpush3.bf16.msra.mxu1 %v2705_v54  ;;  %2178 = vmatprep.mubr.msk.f32.mxu1 %vm2494_vm0, %v2495_v1 }
0x163b   :  { %2286 = vmatprep.subr.bf16.mxu1 %v2493_v0 }
0x170c   :  { %v1081_v63 = vpop.f32.mrb[8].mxu1 }
0x170d   :  { %v2729_v12 = vadd.f32 %v1964_v62, %v1081_v63  ;;  %v2159_v2 = vpop.f32.mrb[9].mxu1 }
0x170f   :  { %v1159_v3 = vadd.f32 %v1155_v60, %v2729_v12 }
0x1711   :  { %2377 = vtanh.f32 %v1159_v3  ;;  %v1966_v5 = vmul.f32 -1.442695, %v1159_v3 }
0x1713   :  { %2379 = vpow2.f32 %v1966_v5 }
0x171b   :  { %v2378_v4 = vpop.eup %2377 }
0x171c   :  { %1169 = vrot.lane.b32.xlu0 %v2378_v4, %s2498_s20 }
0x171d   :  { %v2380_v6 = vpop.eup %2379 }
0x171e   :  { %v1163_v7 = vadd.f32 1.0, %v2380_v6 }
0x1720   :  { %2381 = vrcp.f32 %v1163_v7 }
0x172a   :  { %v2382_v9 = vpop.eup %2381 }
0x172b   :  { %v1167_v13 = vmul.f32 0.0, %v2382_v9 }
0x178e   :  { %v1170_v10 = vpop.permute.xlu0 %1169 }
0x178f   :  { %v1172_v11 = vmul.f32 %v2382_v9, %v1170_v10 }
0x1791   :  { %1174 = vrot.lane.b32.xlu1 %v1172_v11, %s2499_s6 }
0x1803   :  { %v1175_v14 = vpop.permute.xlu1 %1174 }
0x1804   :  { %v1177_v16 = vadd.f32 %v1175_v14, %v1167_v13 }
0x1806   :  { %2383 = vtanh.f32 %v1177_v16 }
0x1810   :  { %v2384_v18 = vpop.eup %2383 }
0x1811   :  { %1180 = vrot.lane.b32.xlu0 %v2384_v18, %s2499_s6 }
0x1883   :  { %v1181_v19 = vpop.permute.xlu0 %1180 }
0x1884   :  { %v2735_v20 = vmul.f32 %v2382_v9, %v1181_v19 }
0x1886   :  { %1185 = vrot.lane.b32.xlu1 %v2735_v20, %s2500_s21 }
0x18f8   :  { %v1186_v21 = vpop.permute.xlu1 %1185 }
0x18f9   :  { %2172 = vmatmul.mubr.msk.f32.vlgmr.msra.gmra.mrb[12].mxu0 %vm65_vm1, %v1186_v21 }
0x18fa   :  { %2285 = vmatpush3.bf16.msra.mxu0 %v2705_v54  ;;  %2185 = vmatprep.mubr.msk.f32.mxu0 %vm2494_vm0, %v2495_v1 }
0x18fb   :  { %2289 = vmatprep.subr.bf16.mxu0 %v2493_v0 }
0x19cc   :  { %v1255_v22 = vpop.f32.mrb[12].mxu0 }
0x19cd   :  { %v1259_v23 = vadd.f32 %v1255_v22, %v2729_v12  ;;  %v2173_v24 = vpop.f32.mrb[13].mxu0 }
0x19cf   :  { %2385 = vtanh.f32 %v1259_v23  ;;  %v1968_v26 = vmul.f32 -1.442695, %v1259_v23 }
0x19d1   :  { %2387 = vpow2.f32 %v1968_v26 }
0x19d9   :  { %v2386_v25 = vpop.eup %2385 }
0x19da   :  { %1269 = vrot.lane.b32.xlu0 %v2386_v25, %s2498_s20 }
0x19db   :  { %v2388_v27 = vpop.eup %2387 }
0x19dc   :  { %v1263_v28 = vadd.f32 1.0, %v2388_v27 }
0x19de   :  { %2389 = vrcp.f32 %v1263_v28 }
0x19e8   :  { %v2390_v29 = vpop.eup %2389 }
0x19e9   :  { %v1267_v17 = vmul.f32 %v2390_v29, %v1177_v16 }
0x1a4c   :  { %v1270_v30 = vpop.permute.xlu0 %1269 }
0x1a4d   :  { %v1272_v31 = vmul.f32 %v2390_v29, %v1270_v30 }
0x1a4f   :  { %1274 = vrot.lane.b32.xlu1 %v1272_v31, %s2499_s6 }
0x1ac1   :  { %v1275_v32 = vpop.permute.xlu1 %1274 }
0x1ac2   :  { %v1277_v33 = vadd.f32 %v1275_v32, %v1267_v17 }
0x1ac4   :  { %2391 = vtanh.f32 %v1277_v33 }
0x1ace   :  { %v2392_v34 = vpop.eup %2391 }
0x1acf   :  { %1280 = vrot.lane.b32.xlu0 %v2392_v34, %s2499_s6 }
0x1b41   :  { %v1281_v35 = vpop.permute.xlu0 %1280 }
0x1b42   :  { %v2748_v36 = vmul.f32 %v2390_v29, %v1281_v35 }
0x1b44   :  { %1285 = vrot.lane.b32.xlu1 %v2748_v36, %s2500_s21 }
0x1bb6   :  { %v1286_v37 = vpop.permute.xlu1 %1285 }
0x1bb7   :  { %2179 = vmatmul.mubr.msk.f32.vlgmr.msra.gmra.mrb[10].mxu1 %vm65_vm1, %v1286_v37 }
0x1bb8   :  { %2288 = vmatpush3.bf16.msra.mxu1 %v2705_v54  ;;  %2192 = vmatprep.mubr.msk.f32.mxu1 %vm2494_vm0, %v2495_v1 }
0x1bb9   :  { %2292 = vmatprep.subr.bf16.mxu1 %v2493_v0 }
0x1c8a   :  { %v1355_v38 = vpop.f32.mrb[10].mxu1 }
0x1c8b   :  { %v1359_v39 = vadd.f32 %v1355_v38, %v2729_v12  ;;  %v2180_v40 = vpop.f32.mrb[11].mxu1 }
0x1c8d   :  { %2393 = vtanh.f32 %v1359_v39  ;;  %v1970_v42 = vmul.f32 -1.442695, %v1359_v39 }
0x1c8f   :  { %2395 = vpow2.f32 %v1970_v42 }
0x1c97   :  { %v2394_v41 = vpop.eup %2393 }
0x1c98   :  { %1369 = vrot.lane.b32.xlu0 %v2394_v41, %s2498_s20 }
0x1c99   :  { %v2396_v43 = vpop.eup %2395 }
0x1c9a   :  { %v1363_v44 = vadd.f32 1.0, %v2396_v43 }
0x1c9c   :  { %2397 = vrcp.f32 %v1363_v44 }
0x1ca6   :  { %v2398_v45 = vpop.eup %2397 }
0x1ca7   :  { %v1367_v15 = vmul.f32 %v2398_v45, %v1277_v33 }
0x1d0a   :  { %v1370_v46 = vpop.permute.xlu0 %1369 }
0x1d0b   :  { %v1372_v47 = vmul.f32 %v2398_v45, %v1370_v46 }
0x1d0d   :  { %1374 = vrot.lane.b32.xlu1 %v1372_v47, %s2499_s6 }
0x1d7f   :  { %v1375_v48 = vpop.permute.xlu1 %1374 }
0x1d80   :  { %v1377_v49 = vadd.f32 %v1375_v48, %v1367_v15 }
0x1d82   :  { %2399 = vtanh.f32 %v1377_v49 }
0x1d8c   :  { %v2400_v50 = vpop.eup %2399 }
0x1d8d   :  { %1380 = vrot.lane.b32.xlu0 %v2400_v50, %s2499_s6 }
0x1dff   :  { %v1381_v51 = vpop.permute.xlu0 %1380 }
0x1e00   :  { %v2761_v52 = vmul.f32 %v2398_v45, %v1381_v51 }
0x1e02   :  { %1385 = vrot.lane.b32.xlu1 %v2761_v52, %s2500_s21 }
0x1e74   :  { %v1386_v53 = vpop.permute.xlu1 %1385 }
0x1e75   :  { %2186 = vmatmul.mubr.msk.f32.vlgmr.msra.gmra.mrb[14].mxu0 %vm65_vm1, %v1386_v53 }
0x1e76   :  { %2291 = vmatpush3.bf16.msra.mxu0 %v2705_v54  ;;  %2199 = vmatprep.mubr.msk.f32.mxu0 %vm2494_vm0, %v2495_v1 }
0x1e77   :  { %2295 = vmatprep.subr.bf16.mxu0 %v2493_v0 }
0x1f48   :  { %v1455_v55 = vpop.f32.mrb[14].mxu0 }
0x1f49   :  { %v1459_v56 = vadd.f32 %v1455_v55, %v2729_v12  ;;  %v2187_v57 = vpop.f32.mrb[15].mxu0 }
0x1f4b   :  { %2401 = vtanh.f32 %v1459_v56  ;;  %v1972_v8 = vmul.f32 -1.442695, %v1459_v56 }
0x1f4d   :  { %2403 = vpow2.f32 %v1972_v8 }
0x1f55   :  { %v2402_v59 = vpop.eup %2401 }
0x1f56   :  { %1469 = vrot.lane.b32.xlu0 %v2402_v59, %s2498_s20 }
0x1f57   :  { %v2404_v60 = vpop.eup %2403 }
0x1f58   :  { %v1463_v61 = vadd.f32 1.0, %v2404_v60 }
0x1f5a   :  { %2405 = vrcp.f32 %v1463_v61 }
0x1f64   :  { %v2406_v62 = vpop.eup %2405 }
0x1f65   :  { %v1467_v3 = vmul.f32 %v2406_v62, %v1377_v49 }
0x1fc8   :  { %v1470_v63 = vpop.permute.xlu0 %1469 }
0x1fc9   :  { %v1472_v2 = vmul.f32 %v2406_v62, %v1470_v63 }
0x1fcb   :  { %1474 = vrot.lane.b32.xlu1 %v1472_v2, %s2499_s6 }
0x203d   :  { %v1475_v0 = vpop.permute.xlu1 %1474 }
0x203e   :  { %v1477_v4 = vadd.f32 %v1475_v0, %v1467_v3 }
0x2040   :  { %2407 = vtanh.f32 %v1477_v4 }
0x204a   :  { %v2408_v5 = vpop.eup %2407 }
0x204b   :  { %1480 = vrot.lane.b32.xlu0 %v2408_v5, %s2499_s6 }
0x20bd   :  { %v1481_v6 = vpop.permute.xlu0 %1480 }
0x20be   :  { %v2774_v7 = vmul.f32 %v2406_v62, %v1481_v6 }
0x20c0   :  { %1485 = vrot.lane.b32.xlu1 %v2774_v7, %s2500_s21 }
0x2132   :  { %v1486_v9 = vpop.permute.xlu1 %1485 }
0x2133   :  { %2193 = vmatmul.mubr.msk.f32.vlgmr.msra.gmra.mrb[12].mxu1 %vm65_vm1, %v1486_v9 }
0x2134   :  { %2294 = vmatpush3.bf16.msra.mxu1 %v2705_v54  ;;  %2206 = vmatprep.mubr.msk.f32.mxu1 %vm2494_vm0, %v2495_v1 }
0x2206   :  { %v1555_v10 = vpop.f32.mrb[12].mxu1 }
0x2207   :  { %v1559_v11 = vadd.f32 %v1555_v10, %v2729_v12  ;;  %v2194_v13 = vpop.f32.mrb[13].mxu1 }
0x2209   :  { %2409 = vtanh.f32 %v1559_v11  ;;  %v1974_v16 = vmul.f32 -1.442695, %v1559_v11 }
0x220b   :  { %2411 = vpow2.f32 %v1974_v16 }
0x2213   :  { %v2410_v14 = vpop.eup %2409 }
0x2214   :  { %1569 = vrot.lane.b32.xlu0 %v2410_v14, %s2498_s20  ;;  %v1884_v14 = vrot.slane %v2735_v20, 2  ;;  %v1888_v20 = vrot.slane %v2748_v36, 2  ;;  %v1892_v36 = vrot.slane %v2761_v52, 2 }
0x2215   :  { %v2412_v18 = vpop.eup %2411 }
0x2216   :  { %v1563_v19 = vadd.f32 1.0, %v2412_v18 }
0x2218   :  { %2413 = vrcp.f32 %v1563_v19 }
0x2222   :  { %v2414_v21 = vpop.eup %2413 }
0x2223   :  { %v1567_v24 = vmul.f32 %v2414_v21, %v1477_v4 }
0x2286   :  { %v1570_v22 = vpop.permute.xlu0 %1569 }
0x2287   :  { %v1572_v23 = vmul.f32 %v2414_v21, %v1570_v22 }
0x2289   :  { %1574 = vrot.lane.b32.xlu1 %v1572_v23, %s2499_s6 }
0x22fb   :  { %v1575_v25 = vpop.permute.xlu1 %1574 }
0x22fc   :  { %v1577_v26 = vadd.f32 %v1575_v25, %v1567_v24 }
0x22fe   :  { %2415 = vtanh.f32 %v1577_v26 }
0x2308   :  { %v2416_v27 = vpop.eup %2415 }
0x2309   :  { %1580 = vrot.lane.b32.xlu0 %v2416_v27, %s2499_s6 }
0x237b   :  { %v1581_v28 = vpop.permute.xlu0 %1580 }
0x237c   :  { %v2786_v29 = vmul.f32 %v2414_v21, %v1581_v28 }
0x237e   :  { %1585 = vrot.lane.b32.xlu1 %v2786_v29, %s2500_s21 }
0x23f0   :  { %v1586_v30 = vpop.permute.xlu1 %1585 }
0x23f1   :  { %2200 = vmatmul.mubr.msk.f32.vlgmr.msra.gmra.mrb[16].mxu0 %vm65_vm1, %v1586_v30 }
0x23f2   :  { %2297 = vmatpush3.bf16.msra.mxu0 %v2705_v54  ;;  %2213 = vmatprep.mubr.msk.f32.mxu0 %vm2494_vm0, %v2495_v1 }
0x24c4   :  { %v1655_v31 = vpop.f32.mrb[16].mxu0 }
0x24c5   :  { %v1659_v17 = vadd.f32 %v1655_v31, %v2729_v12  ;;  %v2201_v32 = vpop.f32.mrb[17].mxu0 }
0x24c6   :  { %v2503_v32 = vmov 1983009808  }
0x24c7   :  { %2417 = vtanh.f32 %v1659_v17  ;;  %v1976_v34 = vmul.f32 -1.442695, %v1659_v17 }
0x24c9   :  { %2419 = vpow2.f32 %v1976_v34  ;;  %v1933_v34 = vlaneseq }
0x24d1   :  { %v2418_v33 = vpop.eup %2417 }
0x24d2   :  { %1669 = vrot.lane.b32.xlu0 %v2418_v33, %s2498_s20  ;;  %v1931_v33 = vunpack.c.l.s4 %v2503_v32 }
0x24d3   :  { %v2420_v35 = vpop.eup %2419 }
0x24d4   :  { %v1663_v37 = vadd.f32 1.0, %v2420_v35 }
0x24d6   :  { %2421 = vrcp.f32 %v1663_v37 }
0x24e0   :  { %v2422_v38 = vpop.eup %2421 }
0x24e1   :  { %v1667_v54 = vmul.f32 %v2422_v38, %v1577_v26 }
0x2544   :  { %v1670_v39 = vpop.permute.xlu0 %1669 }
0x2545   :  { %v1672_v40 = vmul.f32 %v2422_v38, %v1670_v39  ;;  %v1932_v39 = vunpack.c.0.s8 %v1931_v33 }
0x2547   :  { %1674 = vrot.lane.b32.xlu1 %v1672_v40, %s2499_s6  ;;  %v1934_v40 = vshrl.u32 %v1933_v34, 7 }
0x25b9   :  { %v1675_v1 = vpop.permute.xlu1 %1674 }
0x25ba   :  { %v1677_v41 = vadd.f32 %v1675_v1, %v1667_v54 }
0x25bc   :  { %2423 = vtanh.f32 %v1677_v41 }
0x25c6   :  { %v2424_v42 = vpop.eup %2423 }
0x25c7   :  { %1680 = vrot.lane.b32.xlu0 %v2424_v42, %s2499_s6 }
0x2639   :  { %v1681_v43 = vpop.permute.xlu0 %1680 }
0x263a   :  { %v1683_v44 = vmul.f32 %v2422_v38, %v1681_v43 }
0x263c   :  { %1685 = vrot.lane.b32.xlu1 %v1683_v44, %s2500_s21  ;;  %v1902_v16 = vrot.slane %v1683_v44, 2 }
0x26ae   :  { %v1686_v45 = vpop.permute.xlu1 %1685 }
0x26af   :  { %2207 = vmatmul.mubr.msk.f32.vlgmr.msra.gmra.mrb[14].mxu1 %vm65_vm1, %v1686_v45 }
0x2782   :  { %v1755_v46 = vpop.f32.mrb[14].mxu1 }
0x2783   :  { %v1759_v47 = vadd.f32 %v1755_v46, %v2729_v12  ;;  %v2208_v15 = vpop.f32.mrb[15].mxu1 }
0x2785   :  { %2425 = vtanh.f32 %v1759_v47  ;;  %v1978_v49 = vmul.f32 -1.442695, %v1759_v47 }
0x2787   :  { %2427 = vpow2.f32 %v1978_v49 }
0x278f   :  { %v2426_v48 = vpop.eup %2425 }
0x2790   :  { %1769 = vrot.lane.b32.xlu0 %v2426_v48, %s2498_s20 }
0x2791   :  { %v2428_v50 = vpop.eup %2427 }
0x2792   :  { %v1763_v51 = vadd.f32 1.0, %v2428_v50 }
0x2794   :  { %2429 = vrcp.f32 %v1763_v51 }
0x279e   :  { %v2430_v53 = vpop.eup %2429 }
0x279f   :  { %v1767_v57 = vmul.f32 %v2430_v53, %v1677_v41  ;;  %v1935_v41 = vsub.s32 %v1932_v39, %v1934_v40 }
0x2802   :  { %v1770_v55 = vpop.permute.xlu0 %1769 }
0x2803   :  { %v1772_v56 = vmul.f32 %v2430_v53, %v1770_v55 }
0x2805   :  { %1774 = vrot.lane.b32.xlu1 %v1772_v56, %s2499_s6 }
0x2877   :  { %v1775_v59 = vpop.permute.xlu1 %1774 }
0x2878   :  { %v1777_v8 = vadd.f32 %v1775_v59, %v1767_v57 }
0x287a   :  { %2431 = vtanh.f32 %v1777_v8 }
0x2884   :  { %v2432_v60 = vpop.eup %2431 }
0x2885   :  { %1780 = vrot.lane.b32.xlu0 %v2432_v60, %s2499_s6 }
0x28f7   :  { %v1781_v61 = vpop.permute.xlu0 %1780 }
0x28f8   :  { %v1783_v62 = vmul.f32 %v2430_v53, %v1781_v61 }
0x28fa   :  { %1785 = vrot.lane.b32.xlu1 %v1783_v62, %s2500_s21  ;;  %v1906_v23 = vrot.slane %v1783_v62, 2 }
0x296c   :  { %v1786_v63 = vpop.permute.xlu1 %1785 }
0x296d   :  { %2214 = vmatmul.mubr.msk.f32.vlgmr.msra.gmra.mrb[18].mxu0 %vm65_vm1, %v1786_v63 }
0x2a40   :  { %v1855_v2 = vpop.f32.mrb[18].mxu0 }
0x2a41   :  { %v1859_v3 = vadd.f32 %v1855_v2, %v2729_v12  ;;  %v2215_v0 = vpop.f32.mrb[19].mxu0  ;;  %v1894_v12 = vrot.slane %v2774_v7, 2  ;;  %v1898_v7 = vrot.slane %v2786_v29, 2 }
0x2a43   :  { %2433 = vtanh.f32 %v1859_v3  ;;  %v1980_v5 = vmul.f32 -1.442695, %v1859_v3 }
0x2a45   :  { %2435 = vpow2.f32 %v1980_v5 }
0x2a4d   :  { %v2434_v4 = vpop.eup %2433 }
0x2a4e   :  { %1869 = vrot.lane.b32.xlu0 %v2434_v4, %s2498_s20 }
0x2a4f   :  { %v2436_v6 = vpop.eup %2435 }
0x2a50   :  { %v1863_v9 = vadd.f32 1.0, %v2436_v6 }
0x2a52   :  { %2437 = vrcp.f32 %v1863_v9 }
0x2a5c   :  { %v2438_v10 = vpop.eup %2437 }
0x2a5d   :  { %v1867_v18 = vmul.f32 %v2438_v10, %v1777_v8 }
0x2ac0   :  { %v1870_v11 = vpop.permute.xlu0 %1869 }
0x2ac1   :  { %v1872_v13 = vmul.f32 %v2438_v10, %v1870_v11 }
0x2ac3   :  { %1874 = vrot.lane.b32.xlu1 %v1872_v13, %s2499_s6 }
0x2ac7   :  { %1885 = vrot.lane.b32.xlu1 %v1884_v14, %s2500_s21 }
0x2acb   :  { %1895 = vrot.lane.b32.xlu1 %v1894_v12, %s2499_s6 }
0x2acf   :  { %1903 = vrot.lane.b32.xlu1 %v1902_v16, %s2501_s22 }
0x2ad3   :  { %995 = vrot.lane.b32.xlu1 %v2717_v58, %s2497_s3 }
0x2b35   :  { %v1875_v19 = vpop.permute.xlu1 %1874 }
0x2b36   :  { %v1877_v21 = vadd.f32 %v1875_v19, %v1867_v18 }
0x2b38   :  { %2439 = vtanh.f32 %v1877_v21 }
0x2b39   :  { %v1886_v26 = vpop.permute.xlu1 %1885 }
0x2b3d   :  { %v1896_v28 = vpop.permute.xlu1 %1895 }
0x2b41   :  { %v1904_v17 = vpop.permute.xlu1 %1903 }
0x2b42   :  { %v2440_v22 = vpop.eup %2439 }
0x2b43   :  { %1880 = vrot.lane.b32.xlu0 %v2440_v22, %s2499_s6 }
0x2b45   :  { %v996_v54 = vpop.permute.xlu1 %995 }
0x2b46   :  { %v998_v43 = vsel %vm151_vm2, %v996_v54, 0.0 }
0x2b47   :  { %1889 = vrot.lane.b32.xlu0 %v1888_v20, %s2502_s23 }
0x2b4b   :  { %1899 = vrot.lane.b32.xlu0 %v1898_v7, %s2496_s17 }
0x2b4f   :  { %1907 = vrot.lane.b32.xlu0 %v1906_v23, %s2497_s3 }
0x2bb5   :  { %v1881_v24 = vpop.permute.xlu0 %1880 }
0x2bb6   :  { %v1883_v58 = vmul.f32 %v2438_v10, %v1881_v24 }
0x2bb8   :  { %v1911_v25 = vrot.slane %v1883_v58, 2 }
0x2bb9   :  { %v1890_v27 = vpop.permute.xlu0 %1889 }
0x2bba   :  { %1912 = vrot.lane.b32.xlu0 %v1911_v25, %s2498_s20  ;;  %v1915_v30 = vsel %vm65_vm1, %v1886_v26, %v1890_v27 }
0x2bbb   :  { %v1916_v31 = vsel %vm151_vm2, %v1915_v30, %v1892_v36 }
0x2bbc   :  { %v1918_v35 = vsel %vm1917_vm3, %v1916_v31, %v1896_v28 }
0x2bbd   :  { %v1900_v29 = vpop.permute.xlu0 %1899 }
0x2bbe   :  { %v1920_v37 = vsel %vm1919_vm4, %v1918_v35, %v1900_v29 }
0x2bbf   :  { %v1922_v1 = vsel %vm1921_vm5, %v1920_v37, %v1904_v17 }
0x2bc1   :  { %v1908_v38 = vpop.permute.xlu0 %1907 }
0x2bc2   :  { %v1924_v52 = vsel %vm1923_vm6, %v1922_v1, %v1908_v38 }
0x2c2c   :  { %v1913_v42 = vpop.permute.xlu0 %1912 }
0x2c2d   :  { %v1926_v44 = vsel %vm1925_vm7, %v1924_v52, %v1913_v42 }
0x2c2e   :  { %v1929_v45 = vcombine.high %v998_v43, %v1926_v44 }
0x2c30   :  { %v1936_v46 = vrot.slane %v1929_v45, %v1935_v41 }
0x2c32   :  { %v1937_v47 = vcombine.high %v1936_v46, %v1936_v46 }
0x2c34   :  { %1939 = vst [vmem:[%s2835_s7] sm:$0xf] %v1937_v47 }
0x2c35   :  { %1944 = vsyncpa [#allocation3], 1 }
0x2c36   :  { %1945 = vsyncpa [#allocation5], 1 }

</bundles_post_ra>
